<compile_context>
chip_gen: v7x
topology: tpu7x:2x2x1
jax: 0.10.0
libtpu: 0.0.40
codegen_flags: <defaults>
</compile_context>

<pallas_src>
import functools
import math

import jax
import jax.numpy as jnp
from jax.experimental import pallas as pl
from jax.experimental.pallas import tpu as pltpu


_INV_SQRT2 = 0.7071067811865475


def _tile(dim, target, align):
    """Largest tile <= target that is a multiple of `align` and divides dim."""
    if dim <= target:
        return dim
    t = (target // align) * align
    while t >= align:
        if dim % t == 0:
            return t
        t -= align
    return dim  # fall back to the full (untiled) dimension


# ----------------------------- Pallas kernels ------------------------------

def _layernorm_kernel(x_ref, g_ref, b_ref, o_ref):
    """LayerNorm over the last dim (used once, after the embeddings)."""
    x = x_ref[...].astype(jnp.float32)
    mu = jnp.mean(x, axis=-1, keepdims=True)
    var = jnp.mean((x - mu) ** 2, axis=-1, keepdims=True)
    y = (x - mu) * jax.lax.rsqrt(var + 1e-12)
    o_ref[...] = (y * g_ref[...] + b_ref[...]).astype(o_ref.dtype)


def _linear_kernel(x_ref, w_ref, b_ref, o_ref, *, activation):
    """Single-shot (tm, K) @ (K, tn) + bias [+ GELU]; K fully resident."""
    y = jnp.dot(x_ref[...].astype(jnp.bfloat16), w_ref[...],
                preferred_element_type=jnp.float32) + b_ref[...]
    if activation == "gelu":
        y = 0.5 * y * (1.0 + jax.lax.erf(y * _INV_SQRT2))   # exact (erf) GELU
    o_ref[...] = y.astype(o_ref.dtype)


def _encoder_layer_kernel(x_ref, m_ref,
                          wqkv_ref, bqkv_ref, wo_ref, bo_ref,
                          ln1g_ref, ln1b_ref,
                          w1_ref, b1_ref, w2_ref, b2_ref,
                          ln2g_ref, ln2b_ref,
                          o_ref, *, num_heads, head_dim):
    """One full BERT encoder layer for one batch element per grid step.

    x_ref: (1, S, H) bf16 residual stream; m_ref: (1, 1, S) f32 additive mask;
    o_ref: (1, S, H) bf16 layer output.  All weights/biases fully resident.
    """
    H = num_heads * head_dim
    x_bf = x_ref[0]                               # (S, H) bf16
    x = x_bf.astype(jnp.float32)
    mask = m_ref[0]                               # (1, S) f32 additive

    def layer_norm(v, g_ref, b_ref):              # f32 in -> f32 out
        mu = jnp.mean(v, axis=-1, keepdims=True)
        var = jnp.mean((v - mu) ** 2, axis=-1, keepdims=True)
        return (v - mu) * jax.lax.rsqrt(var + 1e-12) * g_ref[...] + b_ref[...]

    # ---- self attention: fused QKV projection (1/sqrt(Dh) folded into Q
    #      weights at init), per-head softmax, context ----------------------
    qkv = jnp.dot(x_bf, wqkv_ref[...],
                  preferred_element_type=jnp.float32) + bqkv_ref[...]

    ctx_heads = []
    for h in range(num_heads):                    # static unrolled loop
        lo = h * head_dim
        q = qkv[:, lo:lo + head_dim].astype(jnp.bfloat16)
        k = qkv[:, H + lo:H + lo + head_dim].astype(jnp.bfloat16)
        v = qkv[:, 2 * H + lo:2 * H + lo + head_dim].astype(jnp.bfloat16)
        # contract last dims -> no k.T transpose through the XLU
        s = jax.lax.dot_general(q, k, (((1,), (1,)), ((), ())),
                                preferred_element_type=jnp.float32)
        s = s + mask                              # f32 softmax math
        s = s - jnp.max(s, axis=-1, keepdims=True)
        p = jnp.exp(s)
        p = p * pl.reciprocal(jnp.sum(p, axis=-1, keepdims=True), approx=True)
        ctx_heads.append(jnp.dot(p.astype(jnp.bfloat16), v,
                                 preferred_element_type=jnp.float32))
    ctx = jnp.concatenate(ctx_heads, axis=-1)     # (S, H) f32

    # ---- attention output projection + residual + LayerNorm (fused) -------
    attn = jnp.dot(ctx.astype(jnp.bfloat16), wo_ref[...],
                   preferred_element_type=jnp.float32) + bo_ref[...]
    h1 = layer_norm(attn + x, ln1g_ref, ln1b_ref)

    # ---- feed-forward (GELU) + residual + LayerNorm (fused) ---------------
    ff = jnp.dot(h1.astype(jnp.bfloat16), w1_ref[...],
                 preferred_element_type=jnp.float32) + b1_ref[...]
    ff = 0.5 * ff * (1.0 + jax.lax.erf(ff * _INV_SQRT2))       # exact GELU
    ff2 = jnp.dot(ff.astype(jnp.bfloat16), w2_ref[...],
                  preferred_element_type=jnp.float32) + b2_ref[...]
    o_ref[0] = layer_norm(ff2 + h1, ln2g_ref, ln2b_ref).astype(o_ref.dtype)


# ------------------------------ op wrappers ---------------------------------

def layernorm(x, gamma, beta, out_dtype=jnp.bfloat16):
    """Row-tiled LayerNorm over the last dim; emits the bf16 residual stream."""
    M, H = x.shape
    tm = _tile(M, 512, 8)
    return pl.pallas_call(
        _layernorm_kernel,
        out_shape=jax.ShapeDtypeStruct((M, H), out_dtype),
        grid=(M // tm,),
        in_specs=[pl.BlockSpec((tm, H), lambda i: (i, 0)),
                  pl.BlockSpec((1, H), lambda i: (0, 0)),
                  pl.BlockSpec((1, H), lambda i: (0, 0))],
        out_specs=pl.BlockSpec((tm, H), lambda i: (i, 0)),
        compiler_params=pltpu.CompilerParams(
            dimension_semantics=("parallel",)),
    )(x, gamma, beta)


def linear(x, w, b, activation=None, out_dtype=jnp.float32):
    """x:(M,K) @ w:(K,N) + b:(1,N); K fully resident (no K grid axis)."""
    M, K = x.shape
    N = w.shape[1]
    tm = _tile(M, 512, 8)
    tn = _tile(N, 256, 128)
    kernel = functools.partial(_linear_kernel, activation=activation)
    return pl.pallas_call(
        kernel,
        out_shape=jax.ShapeDtypeStruct((M, N), out_dtype),
        grid=(M // tm, N // tn),
        in_specs=[pl.BlockSpec((tm, K), lambda i, j: (i, 0)),
                  pl.BlockSpec((K, tn), lambda i, j: (0, j)),
                  pl.BlockSpec((1, tn), lambda i, j: (0, j))],
        out_specs=pl.BlockSpec((tm, tn), lambda i, j: (i, j)),
        compiler_params=pltpu.CompilerParams(
            dimension_semantics=("parallel", "parallel")),
    )(x, w, b)


def encoder_layer(x, add_mask, lp, num_heads, head_dim):
    """One fused BERT encoder layer.  x: (B, S, H) bf16 -> (B, S, H) bf16."""
    B, S, H = x.shape
    I = lp["w1"].shape[1]
    kernel = functools.partial(_encoder_layer_kernel,
                               num_heads=num_heads, head_dim=head_dim)

    def resident(shape):
        # constant block index across the batch grid -> weight DMA'd once
        return pl.BlockSpec(shape, lambda b: (0,) * len(shape))

    return pl.pallas_call(
        kernel,
        out_shape=jax.ShapeDtypeStruct((B, S, H), jnp.bfloat16),
        grid=(B,),
        in_specs=[
            pl.BlockSpec((1, S, H), lambda b: (b, 0, 0)),    # x (residual)
            pl.BlockSpec((1, 1, S), lambda b: (b, 0, 0)),    # additive mask
            resident((H, 3 * H)), resident((1, 3 * H)),      # wqkv, bqkv
            resident((H, H)), resident((1, H)),              # wo, bo
            resident((1, H)), resident((1, H)),              # ln1 gamma/beta
            resident((H, I)), resident((1, I)),              # w1, b1
            resident((I, H)), resident((1, H)),              # w2, b2
            resident((1, H)), resident((1, H)),              # ln2 gamma/beta
        ],
        out_specs=pl.BlockSpec((1, S, H), lambda b: (b, 0, 0)),
        compiler_params=pltpu.CompilerParams(
            dimension_semantics=("parallel",)),
    )(x, add_mask,
      lp["wqkv"], lp["bqkv"], lp["wo"], lp["bo"],
      lp["ln1_g"], lp["ln1_b"],
      lp["w1"], lp["b1"], lp["w2"], lp["b2"],
      lp["ln2_g"], lp["ln2_b"])


# ------------------------------ model ---------------------------------------

def init_params(key, cfg):
    std = 0.02
    H, I = cfg["hidden"], cfg["intermediate"]
    Dh = H // cfg["num_heads"]
    scale = 1.0 / math.sqrt(Dh)
    n_pad = ((cfg["num_labels"] + 127) // 128) * 128   # lane-dense head
    keys = iter(jax.random.split(key, 128))

    def nrm(shape):
        return std * jax.random.normal(next(keys), shape, dtype=jnp.float32)

    fc_w = jnp.zeros((H, n_pad), jnp.float32).at[:, :cfg["num_labels"]].set(
        nrm((H, cfg["num_labels"])))

    params = {
        "word_emb": nrm((cfg["vocab"], H)),
        "pos_emb": nrm((cfg["max_pos"], H)),
        "type_emb": nrm((2, H)),
        "emb_ln_g": jnp.ones((1, H), jnp.float32),
        "emb_ln_b": jnp.zeros((1, H), jnp.float32),
        "layers": [],
        # matmul weights stored in bf16 (f32 MXU accumulation inside kernels)
        "fc_w_pad": fc_w.astype(jnp.bfloat16),
        "fc_b_pad": jnp.zeros((1, n_pad), jnp.float32),
    }
    for _ in range(cfg["num_layers"]):
        wq, wk, wv = nrm((H, H)), nrm((H, H)), nrm((H, H))
        # fold the 1/sqrt(head_dim) attention scale into the Q projection
        wqkv = jnp.concatenate([wq * scale, wk, wv], axis=1)
        params["layers"].append({
            "wqkv": wqkv.astype(jnp.bfloat16),
            "bqkv": jnp.zeros((1, 3 * H), jnp.float32),   # Q bias also scaled (zero here)
            "wo": nrm((H, H)).astype(jnp.bfloat16),
            "bo": jnp.zeros((1, H), jnp.float32),
            "ln1_g": jnp.ones((1, H), jnp.float32),
            "ln1_b": jnp.zeros((1, H), jnp.float32),
            "w1": nrm((H, I)).astype(jnp.bfloat16),
            "b1": jnp.zeros((1, I), jnp.float32),
            "w2": nrm((I, H)).astype(jnp.bfloat16),
            "b2": jnp.zeros((1, H), jnp.float32),
            "ln2_g": jnp.ones((1, H), jnp.float32),
            "ln2_b": jnp.zeros((1, H), jnp.float32),
        })
    return params


def my_model_forward(params, input_ids, attention_mask, cfg):
    B, S = input_ids.shape
    H = cfg["hidden"]
    nh = cfg["num_heads"]
    Dh = H // nh

    # --- embeddings (gather is plain-JAX glue) ---
    tok = jnp.take(params["word_emb"], input_ids, axis=0)        # (B, S, H)
    pos = params["pos_emb"][:S][None, :, :]                      # (1, S, H)
    typ = params["type_emb"][0][None, None, :]                   # token_type_ids = 0
    x2d = (tok + pos + typ).astype(jnp.float32).reshape(B * S, H)
    # embedding LayerNorm emits the bf16 residual stream directly
    x = layernorm(x2d, params["emb_ln_g"], params["emb_ln_b"],
                  out_dtype=jnp.bfloat16).reshape(B, S, H)

    # HF-style extended attention mask: 0 where attended, -1e9 where masked.
    add_mask = ((1.0 - attention_mask.astype(jnp.float32)) * -1e9).reshape(B, 1, S)

    # one fused pallas_call per encoder layer
    for lp in params["layers"]:
        x = encoder_layer(x, add_mask, lp, nh, Dh)               # (B, S, H) bf16

    # dropout(p=0.1): inference-mode identity.
    # classifier head as a lane-dense (padded-to-128) GEMM, sliced back in JAX.
    logits_p = linear(x.reshape(B * S, H),
                      params["fc_w_pad"], params["fc_b_pad"])    # (B*S, 128) f32
    logits = logits_p[:, :cfg["num_labels"]]
    return logits.reshape(B, S, cfg["num_labels"])


# ------------------------------ main -----------------------------------------

if __name__ == "__main__":
    cfg = dict(vocab=128, hidden=64, intermediate=256, num_heads=4,
               num_layers=2, max_pos=32, num_labels=22)
    B, S = 2, 8

    key = jax.random.PRNGKey(0)
    k_param, k_ids = jax.random.split(key)
    params = init_params(k_param, cfg)

    input_ids = jax.random.randint(k_ids, (B, S), 0, cfg["vocab"], dtype=jnp.int32)
    attention_mask = jnp.array(
        [[1, 1, 1, 1, 1, 1, 1, 1],
         [1, 1, 1, 1, 1, 1, 0, 0]], dtype=jnp.int32)

    fwd = jax.jit(lambda p, ids, m: my_model_forward(p, ids, m, cfg))
    out = fwd(params, input_ids, attention_mask)
    out = jax.block_until_ready(out)
    assert out.shape == (B, S, cfg["num_labels"])
    assert bool(jnp.all(jnp.isfinite(out)))
    print("KERNEL_OK")
</pallas_src>

<mosaic_0001>
module attributes {stable_mosaic.version = 11 : i64} {
  func.func @_layernorm_kernel(%arg0: i32, %arg1: memref<16x64xf32, #tpu.memory_space<vmem>>, %arg2: memref<1x64xf32, #tpu.memory_space<vmem>>, %arg3: memref<1x64xf32, #tpu.memory_space<vmem>>, %arg4: memref<16x64xbf16, #tpu.memory_space<vmem>>) attributes {dimension_semantics = [#tpu.dimension_semantics<parallel>], iteration_bounds = array<i64: 1>, scalar_prefetch = 0 : i64, scratch_operands = 0 : i64, tpu.core_type = #tpu.core_type<tc>, window_params = [{transform_indices = @transform_0, window_bounds = array<i64: 16, 64>}, {pipeline_mode = #tpu.pipeline_mode<synchronous>, transform_indices = @transform_1, window_bounds = array<i64: 1, 64>}, {pipeline_mode = #tpu.pipeline_mode<synchronous>, transform_indices = @transform_2, window_bounds = array<i64: 1, 64>}, {transform_indices = @transform_3, window_bounds = array<i64: 16, 64>}]} {
    %c0 = arith.constant 0 : index
    %c0_0 = arith.constant 0 : index
    %0 = vector.load %arg1[%c0, %c0_0] : memref<16x64xf32, #tpu.memory_space<vmem>>, vector<16x64xf32>
    %cst = arith.constant dense<0.000000e+00> : vector<16xf32>
    %1 = vector.multi_reduction <add>, %0, %cst [1] : vector<16x64xf32> to vector<16xf32>
    %2 = vector.shape_cast %1 : vector<16xf32> to vector<16x1xf32>
    %cst_1 = arith.constant 6.400000e+01 : f32
    %3 = vector.broadcast %cst_1 : f32 to vector<16x1xf32>
    %4 = arith.divf %2, %3 : vector<16x1xf32>
    %5 = vector.broadcast %4 : vector<16x1xf32> to vector<16x64xf32>
    %6 = arith.subf %0, %5 : vector<16x64xf32>
    %7 = arith.mulf %6, %6 : vector<16x64xf32>
    %cst_2 = arith.constant dense<0.000000e+00> : vector<16xf32>
    %8 = vector.multi_reduction <add>, %7, %cst_2 [1] : vector<16x64xf32> to vector<16xf32>
    %9 = vector.shape_cast %8 : vector<16xf32> to vector<16x1xf32>
    %cst_3 = arith.constant 6.400000e+01 : f32
    %10 = vector.broadcast %cst_3 : f32 to vector<16x1xf32>
    %11 = arith.divf %9, %10 : vector<16x1xf32>
    %12 = vector.broadcast %4 : vector<16x1xf32> to vector<16x64xf32>
    %13 = arith.subf %0, %12 : vector<16x64xf32>
    %cst_4 = arith.constant 9.99999996E-13 : f32
    %14 = vector.broadcast %cst_4 : f32 to vector<16x1xf32>
    %15 = arith.addf %11, %14 : vector<16x1xf32>
    %16 = math.rsqrt %15 : vector<16x1xf32>
    %17 = vector.broadcast %16 : vector<16x1xf32> to vector<16x64xf32>
    %18 = arith.mulf %13, %17 : vector<16x64xf32>
    %c0_5 = arith.constant 0 : index
    %c0_6 = arith.constant 0 : index
    %19 = vector.load %arg2[%c0_5, %c0_6] : memref<1x64xf32, #tpu.memory_space<vmem>>, vector<1x64xf32>
    %20 = vector.broadcast %19 : vector<1x64xf32> to vector<16x64xf32>
    %21 = arith.mulf %18, %20 : vector<16x64xf32>
    %c0_7 = arith.constant 0 : index
    %c0_8 = arith.constant 0 : index
    %22 = vector.load %arg3[%c0_7, %c0_8] : memref<1x64xf32, #tpu.memory_space<vmem>>, vector<1x64xf32>
    %23 = vector.broadcast %22 : vector<1x64xf32> to vector<16x64xf32>
    %24 = arith.addf %21, %23 : vector<16x64xf32>
    %25 = arith.truncf %24 : vector<16x64xf32> to vector<16x64xbf16>
    %c0_9 = arith.constant 0 : index
    %c0_10 = arith.constant 0 : index
    %26 = vector.load %arg4[%c0_9, %c0_10] : memref<16x64xbf16, #tpu.memory_space<vmem>>, vector<16x64xbf16>
    tpu.vector_store %arg4[%c0_9, %c0_10], %25 {strides = array<i32>} : memref<16x64xbf16, #tpu.memory_space<vmem>>, vector<16x64xbf16>,
    return
  }
  func.func @transform_0(%arg0: i32) -> (i32, i32) {
    %c0_i32 = arith.constant 0 : i32
    %c0_i32_0 = arith.constant 0 : i32
    return %arg0, %c0_i32 : i32, i32
  }
  func.func @transform_1(%arg0: i32) -> (i32, i32) {
    %c0_i32 = arith.constant 0 : i32
    %c0_i32_0 = arith.constant 0 : i32
    %c0_i32_1 = arith.constant 0 : i32
    return %c0_i32, %c0_i32_0 : i32, i32
  }
  func.func @transform_2(%arg0: i32) -> (i32, i32) {
    %c0_i32 = arith.constant 0 : i32
    %c0_i32_0 = arith.constant 0 : i32
    %c0_i32_1 = arith.constant 0 : i32
    return %c0_i32, %c0_i32_0 : i32, i32
  }
  func.func @transform_3(%arg0: i32) -> (i32, i32) {
    %c0_i32 = arith.constant 0 : i32
    %c0_i32_0 = arith.constant 0 : i32
    return %arg0, %c0_i32 : i32, i32
  }
}

module attributes {stable_mosaic.version = 11 : i64} {
  func.func @_linear_kernel(%arg0: i32, %arg1: i32, %arg2: memref<16x64xbf16, #tpu.memory_space<vmem>>, %arg3: memref<64x128xbf16, #tpu.memory_space<vmem>>, %arg4: memref<1x128xf32, #tpu.memory_space<vmem>>, %arg5: memref<16x128xf32, #tpu.memory_space<vmem>>) attributes {dimension_semantics = [#tpu.dimension_semantics<parallel>, #tpu.dimension_semantics<parallel>], iteration_bounds = array<i64: 1, 1>, scalar_prefetch = 0 : i64, scratch_operands = 0 : i64, tpu.core_type = #tpu.core_type<tc>, window_params = [{transform_indices = @transform_0, window_bounds = array<i64: 16, 64>}, {transform_indices = @transform_1, window_bounds = array<i64: 64, 128>}, {transform_indices = @transform_2, window_bounds = array<i64: 1, 128>}, {transform_indices = @transform_3, window_bounds = array<i64: 16, 128>}]} {
    %c0 = arith.constant 0 : index
    %c0_0 = arith.constant 0 : index
    %0 = vector.load %arg2[%c0, %c0_0] : memref<16x64xbf16, #tpu.memory_space<vmem>>, vector<16x64xbf16>
    %c0_1 = arith.constant 0 : index
    %c0_2 = arith.constant 0 : index
    %1 = vector.load %arg3[%c0_1, %c0_2] : memref<64x128xbf16, #tpu.memory_space<vmem>>, vector<64x128xbf16>
    %cst = arith.constant dense<0.000000e+00> : vector<16x128xf32>
    %2 = tpu.matmul %0, %1, %cst {dimension_numbers = #tpu.dot_dimension_numbers<[1], [0], [0], [1], [0, 0, 1, 1], [], []>} : vector<16x64xbf16>, vector<64x128xbf16>, vector<16x128xf32> -> vector<16x128xf32>
    %c0_3 = arith.constant 0 : index
    %c0_4 = arith.constant 0 : index
    %3 = vector.load %arg4[%c0_3, %c0_4] : memref<1x128xf32, #tpu.memory_space<vmem>>, vector<1x128xf32>
    %4 = vector.broadcast %3 : vector<1x128xf32> to vector<16x128xf32>
    %5 = arith.addf %2, %4 : vector<16x128xf32>
    %c0_5 = arith.constant 0 : index
    %c0_6 = arith.constant 0 : index
    %6 = vector.load %arg5[%c0_5, %c0_6] : memref<16x128xf32, #tpu.memory_space<vmem>>, vector<16x128xf32>
    tpu.vector_store %arg5[%c0_5, %c0_6], %5 {strides = array<i32>} : memref<16x128xf32, #tpu.memory_space<vmem>>, vector<16x128xf32>,
    return
  }
  func.func @transform_0(%arg0: i32, %arg1: i32) -> (i32, i32) {
    %c0_i32 = arith.constant 0 : i32
    %c0_i32_0 = arith.constant 0 : i32
    return %arg0, %c0_i32 : i32, i32
  }
  func.func @transform_1(%arg0: i32, %arg1: i32) -> (i32, i32) {
    %c0_i32 = arith.constant 0 : i32
    %c0_i32_0 = arith.constant 0 : i32
    return %c0_i32, %arg1 : i32, i32
  }
  func.func @transform_2(%arg0: i32, %arg1: i32) -> (i32, i32) {
    %c0_i32 = arith.constant 0 : i32
    %c0_i32_0 = arith.constant 0 : i32
    return %c0_i32, %arg1 : i32, i32
  }
  func.func @transform_3(%arg0: i32, %arg1: i32) -> (i32, i32) {
    %c0_i32 = arith.constant 0 : i32
    return %arg0, %arg1 : i32, i32
  }
}

module attributes {stable_mosaic.version = 11 : i64} {
  func.func @_encoder_layer_kernel(%arg0: i32, %arg1: memref<1x8x64xbf16, #tpu.memory_space<vmem>>, %arg2: memref<1x1x8xf32, #tpu.memory_space<vmem>>, %arg3: memref<64x192xbf16, #tpu.memory_space<vmem>>, %arg4: memref<1x192xf32, #tpu.memory_space<vmem>>, %arg5: memref<64x64xbf16, #tpu.memory_space<vmem>>, %arg6: memref<1x64xf32, #tpu.memory_space<vmem>>, %arg7: memref<1x64xf32, #tpu.memory_space<vmem>>, %arg8: memref<1x64xf32, #tpu.memory_space<vmem>>, %arg9: memref<64x256xbf16, #tpu.memory_space<vmem>>, %arg10: memref<1x256xf32, #tpu.memory_space<vmem>>, %arg11: memref<256x64xbf16, #tpu.memory_space<vmem>>, %arg12: memref<1x64xf32, #tpu.memory_space<vmem>>, %arg13: memref<1x64xf32, #tpu.memory_space<vmem>>, %arg14: memref<1x64xf32, #tpu.memory_space<vmem>>, %arg15: memref<1x8x64xbf16, #tpu.memory_space<vmem>>) attributes {dimension_semantics = [#tpu.dimension_semantics<parallel>], iteration_bounds = array<i64: 2>, scalar_prefetch = 0 : i64, scratch_operands = 0 : i64, tpu.core_type = #tpu.core_type<tc>, window_params = [{transform_indices = @transform_0, window_bounds = array<i64: 1, 8, 64>}, {transform_indices = @transform_1, window_bounds = array<i64: 1, 1, 8>}, {pipeline_mode = #tpu.pipeline_mode<synchronous>, transform_indices = @transform_2, window_bounds = array<i64: 64, 192>}, {pipeline_mode = #tpu.pipeline_mode<synchronous>, transform_indices = @transform_3, window_bounds = array<i64: 1, 192>}, {pipeline_mode = #tpu.pipeline_mode<synchronous>, transform_indices = @transform_4, window_bounds = array<i64: 64, 64>}, {pipeline_mode = #tpu.pipeline_mode<synchronous>, transform_indices = @transform_5, window_bounds = array<i64: 1, 64>}, {pipeline_mode = #tpu.pipeline_mode<synchronous>, transform_indices = @transform_6, window_bounds = array<i64: 1, 64>}, {pipeline_mode = #tpu.pipeline_mode<synchronous>, transform_indices = @transform_7, window_bounds = array<i64: 1, 64>}, {pipeline_mode = #tpu.pipeline_mode<synchronous>, transform_indices = @transform_8, window_bounds = array<i64: 64, 256>}, {pipeline_mode = #tpu.pipeline_mode<synchronous>, transform_indices = @transform_9, window_bounds = array<i64: 1, 256>}, {pipeline_mode = #tpu.pipeline_mode<synchronous>, transform_indices = @transform_10, window_bounds = array<i64: 256, 64>}, {pipeline_mode = #tpu.pipeline_mode<synchronous>, transform_indices = @transform_11, window_bounds = array<i64: 1, 64>}, {pipeline_mode = #tpu.pipeline_mode<synchronous>, transform_indices = @transform_12, window_bounds = array<i64: 1, 64>}, {pipeline_mode = #tpu.pipeline_mode<synchronous>, transform_indices = @transform_13, window_bounds = array<i64: 1, 64>}, {transform_indices = @transform_14, window_bounds = array<i64: 1, 8, 64>}]} {
    %c0 = arith.constant 0 : index
    %c0_0 = arith.constant 0 : index
    %c0_1 = arith.constant 0 : index
    %0 = vector.load %arg1[%c0, %c0_0, %c0_1] : memref<1x8x64xbf16, #tpu.memory_space<vmem>>, vector<1x8x64xbf16>
    %1 = vector.shape_cast %0 : vector<1x8x64xbf16> to vector<8x64xbf16>
    %2 = arith.extf %1 : vector<8x64xbf16> to vector<8x64xf32>
    %c0_2 = arith.constant 0 : index
    %c0_3 = arith.constant 0 : index
    %c0_4 = arith.constant 0 : index
    %3 = vector.load %arg2[%c0_2, %c0_3, %c0_4] : memref<1x1x8xf32, #tpu.memory_space<vmem>>, vector<1x1x8xf32>
    %4 = vector.shape_cast %3 : vector<1x1x8xf32> to vector<1x8xf32>
    %c0_5 = arith.constant 0 : index
    %c0_6 = arith.constant 0 : index
    %5 = vector.load %arg3[%c0_5, %c0_6] : memref<64x192xbf16, #tpu.memory_space<vmem>>, vector<64x192xbf16>
    %cst = arith.constant dense<0.000000e+00> : vector<8x192xf32>
    %6 = tpu.matmul %1, %5, %cst {dimension_numbers = #tpu.dot_dimension_numbers<[1], [0], [0], [1], [0, 0, 1, 1], [], []>} : vector<8x64xbf16>, vector<64x192xbf16>, vector<8x192xf32> -> vector<8x192xf32>
    %c0_7 = arith.constant 0 : index
    %c0_8 = arith.constant 0 : index
    %7 = vector.load %arg4[%c0_7, %c0_8] : memref<1x192xf32, #tpu.memory_space<vmem>>, vector<1x192xf32>
    %8 = vector.broadcast %7 : vector<1x192xf32> to vector<8x192xf32>
    %9 = arith.addf %6, %8 : vector<8x192xf32>
    %10 = vector.extract_strided_slice %9 {offsets = [0, 0], sizes = [8, 16], strides = [1, 1]} : vector<8x192xf32> to vector<8x16xf32>
    %11 = arith.truncf %10 : vector<8x16xf32> to vector<8x16xbf16>
    %12 = vector.extract_strided_slice %9 {offsets = [0, 64], sizes = [8, 16], strides = [1, 1]} : vector<8x192xf32> to vector<8x16xf32>
    %13 = arith.truncf %12 : vector<8x16xf32> to vector<8x16xbf16>
    %14 = vector.extract_strided_slice %9 {offsets = [0, 128], sizes = [8, 16], strides = [1, 1]} : vector<8x192xf32> to vector<8x16xf32>
    %15 = arith.truncf %14 : vector<8x16xf32> to vector<8x16xbf16>
    %cst_9 = arith.constant dense<0.000000e+00> : vector<8x8xf32>
    %16 = tpu.matmul %11, %13, %cst_9 {dimension_numbers = #tpu.dot_dimension_numbers<[1], [1], [0], [0], [0, 0, 1, 0], [], []>} : vector<8x16xbf16>, vector<8x16xbf16>, vector<8x8xf32> -> vector<8x8xf32>
    %17 = vector.broadcast %4 : vector<1x8xf32> to vector<8x8xf32>
    %18 = arith.addf %16, %17 : vector<8x8xf32>
    %cst_10 = arith.constant dense<0xFF800000> : vector<8xf32>
    %19 = vector.multi_reduction <maximumf>, %18, %cst_10 [1] : vector<8x8xf32> to vector<8xf32>
    %20 = vector.shape_cast %19 : vector<8xf32> to vector<8x1xf32>
    %21 = vector.broadcast %20 : vector<8x1xf32> to vector<8x8xf32>
    %22 = arith.subf %18, %21 : vector<8x8xf32>
    %23 = math.exp %22 : vector<8x8xf32>
    %cst_11 = arith.constant dense<0.000000e+00> : vector<8xf32>
    %24 = vector.multi_reduction <add>, %23, %cst_11 [1] : vector<8x8xf32> to vector<8xf32>
    %25 = vector.shape_cast %24 : vector<8xf32> to vector<8x1xf32>
    %26 = tpu.reciprocal %25 {approx = true} : vector<8x1xf32> -> vector<8x1xf32>
    %27 = vector.broadcast %26 : vector<8x1xf32> to vector<8x8xf32>
    %28 = arith.mulf %23, %27 : vector<8x8xf32>
    %29 = arith.truncf %28 : vector<8x8xf32> to vector<8x8xbf16>
    %cst_12 = arith.constant dense<0.000000e+00> : vector<8x16xf32>
    %30 = tpu.matmul %29, %15, %cst_12 {dimension_numbers = #tpu.dot_dimension_numbers<[1], [0], [0], [1], [0, 0, 1, 1], [], []>} : vector<8x8xbf16>, vector<8x16xbf16>, vector<8x16xf32> -> vector<8x16xf32>
    %31 = vector.extract_strided_slice %9 {offsets = [0, 16], sizes = [8, 16], strides = [1, 1]} : vector<8x192xf32> to vector<8x16xf32>
    %32 = arith.truncf %31 : vector<8x16xf32> to vector<8x16xbf16>
    %33 = vector.extract_strided_slice %9 {offsets = [0, 80], sizes = [8, 16], strides = [1, 1]} : vector<8x192xf32> to vector<8x16xf32>
    %34 = arith.truncf %33 : vector<8x16xf32> to vector<8x16xbf16>
    %35 = vector.extract_strided_slice %9 {offsets = [0, 144], sizes = [8, 16], strides = [1, 1]} : vector<8x192xf32> to vector<8x16xf32>
    %36 = arith.truncf %35 : vector<8x16xf32> to vector<8x16xbf16>
    %cst_13 = arith.constant dense<0.000000e+00> : vector<8x8xf32>
    %37 = tpu.matmul %32, %34, %cst_13 {dimension_numbers = #tpu.dot_dimension_numbers<[1], [1], [0], [0], [0, 0, 1, 0], [], []>} : vector<8x16xbf16>, vector<8x16xbf16>, vector<8x8xf32> -> vector<8x8xf32>
    %38 = vector.broadcast %4 : vector<1x8xf32> to vector<8x8xf32>
    %39 = arith.addf %37, %38 : vector<8x8xf32>
    %cst_14 = arith.constant dense<0xFF800000> : vector<8xf32>
    %40 = vector.multi_reduction <maximumf>, %39, %cst_14 [1] : vector<8x8xf32> to vector<8xf32>
    %41 = vector.shape_cast %40 : vector<8xf32> to vector<8x1xf32>
    %42 = vector.broadcast %41 : vector<8x1xf32> to vector<8x8xf32>
    %43 = arith.subf %39, %42 : vector<8x8xf32>
    %44 = math.exp %43 : vector<8x8xf32>
    %cst_15 = arith.constant dense<0.000000e+00> : vector<8xf32>
    %45 = vector.multi_reduction <add>, %44, %cst_15 [1] : vector<8x8xf32> to vector<8xf32>
    %46 = vector.shape_cast %45 : vector<8xf32> to vector<8x1xf32>
    %47 = tpu.reciprocal %46 {approx = true} : vector<8x1xf32> -> vector<8x1xf32>
    %48 = vector.broadcast %47 : vector<8x1xf32> to vector<8x8xf32>
    %49 = arith.mulf %44, %48 : vector<8x8xf32>
    %50 = arith.truncf %49 : vector<8x8xf32> to vector<8x8xbf16>
    %cst_16 = arith.constant dense<0.000000e+00> : vector<8x16xf32>
    %51 = tpu.matmul %50, %36, %cst_16 {dimension_numbers = #tpu.dot_dimension_numbers<[1], [0], [0], [1], [0, 0, 1, 1], [], []>} : vector<8x8xbf16>, vector<8x16xbf16>, vector<8x16xf32> -> vector<8x16xf32>
    %52 = vector.extract_strided_slice %9 {offsets = [0, 32], sizes = [8, 16], strides = [1, 1]} : vector<8x192xf32> to vector<8x16xf32>
    %53 = arith.truncf %52 : vector<8x16xf32> to vector<8x16xbf16>
    %54 = vector.extract_strided_slice %9 {offsets = [0, 96], sizes = [8, 16], strides = [1, 1]} : vector<8x192xf32> to vector<8x16xf32>
    %55 = arith.truncf %54 : vector<8x16xf32> to vector<8x16xbf16>
    %56 = vector.extract_strided_slice %9 {offsets = [0, 160], sizes = [8, 16], strides = [1, 1]} : vector<8x192xf32> to vector<8x16xf32>
    %57 = arith.truncf %56 : vector<8x16xf32> to vector<8x16xbf16>
    %cst_17 = arith.constant dense<0.000000e+00> : vector<8x8xf32>
    %58 = tpu.matmul %53, %55, %cst_17 {dimension_numbers = #tpu.dot_dimension_numbers<[1], [1], [0], [0], [0, 0, 1, 0], [], []>} : vector<8x16xbf16>, vector<8x16xbf16>, vector<8x8xf32> -> vector<8x8xf32>
    %59 = vector.broadcast %4 : vector<1x8xf32> to vector<8x8xf32>
    %60 = arith.addf %58, %59 : vector<8x8xf32>
    %cst_18 = arith.constant dense<0xFF800000> : vector<8xf32>
    %61 = vector.multi_reduction <maximumf>, %60, %cst_18 [1] : vector<8x8xf32> to vector<8xf32>
    %62 = vector.shape_cast %61 : vector<8xf32> to vector<8x1xf32>
    %63 = vector.broadcast %62 : vector<8x1xf32> to vector<8x8xf32>
    %64 = arith.subf %60, %63 : vector<8x8xf32>
    %65 = math.exp %64 : vector<8x8xf32>
    %cst_19 = arith.constant dense<0.000000e+00> : vector<8xf32>
    %66 = vector.multi_reduction <add>, %65, %cst_19 [1] : vector<8x8xf32> to vector<8xf32>
    %67 = vector.shape_cast %66 : vector<8xf32> to vector<8x1xf32>
    %68 = tpu.reciprocal %67 {approx = true} : vector<8x1xf32> -> vector<8x1xf32>
    %69 = vector.broadcast %68 : vector<8x1xf32> to vector<8x8xf32>
    %70 = arith.mulf %65, %69 : vector<8x8xf32>
    %71 = arith.truncf %70 : vector<8x8xf32> to vector<8x8xbf16>
    %cst_20 = arith.constant dense<0.000000e+00> : vector<8x16xf32>
    %72 = tpu.matmul %71, %57, %cst_20 {dimension_numbers = #tpu.dot_dimension_numbers<[1], [0], [0], [1], [0, 0, 1, 1], [], []>} : vector<8x8xbf16>, vector<8x16xbf16>, vector<8x16xf32> -> vector<8x16xf32>
    %73 = vector.extract_strided_slice %9 {offsets = [0, 48], sizes = [8, 16], strides = [1, 1]} : vector<8x192xf32> to vector<8x16xf32>
    %74 = arith.truncf %73 : vector<8x16xf32> to vector<8x16xbf16>
    %75 = vector.extract_strided_slice %9 {offsets = [0, 112], sizes = [8, 16], strides = [1, 1]} : vector<8x192xf32> to vector<8x16xf32>
    %76 = arith.truncf %75 : vector<8x16xf32> to vector<8x16xbf16>
    %77 = vector.extract_strided_slice %9 {offsets = [0, 176], sizes = [8, 16], strides = [1, 1]} : vector<8x192xf32> to vector<8x16xf32>
    %78 = arith.truncf %77 : vector<8x16xf32> to vector<8x16xbf16>
    %cst_21 = arith.constant dense<0.000000e+00> : vector<8x8xf32>
    %79 = tpu.matmul %74, %76, %cst_21 {dimension_numbers = #tpu.dot_dimension_numbers<[1], [1], [0], [0], [0, 0, 1, 0], [], []>} : vector<8x16xbf16>, vector<8x16xbf16>, vector<8x8xf32> -> vector<8x8xf32>
    %80 = vector.broadcast %4 : vector<1x8xf32> to vector<8x8xf32>
    %81 = arith.addf %79, %80 : vector<8x8xf32>
    %cst_22 = arith.constant dense<0xFF800000> : vector<8xf32>
    %82 = vector.multi_reduction <maximumf>, %81, %cst_22 [1] : vector<8x8xf32> to vector<8xf32>
    %83 = vector.shape_cast %82 : vector<8xf32> to vector<8x1xf32>
    %84 = vector.broadcast %83 : vector<8x1xf32> to vector<8x8xf32>
    %85 = arith.subf %81, %84 : vector<8x8xf32>
    %86 = math.exp %85 : vector<8x8xf32>
    %cst_23 = arith.constant dense<0.000000e+00> : vector<8xf32>
    %87 = vector.multi_reduction <add>, %86, %cst_23 [1] : vector<8x8xf32> to vector<8xf32>
    %88 = vector.shape_cast %87 : vector<8xf32> to vector<8x1xf32>
    %89 = tpu.reciprocal %88 {approx = true} : vector<8x1xf32> -> vector<8x1xf32>
    %90 = vector.broadcast %89 : vector<8x1xf32> to vector<8x8xf32>
    %91 = arith.mulf %86, %90 : vector<8x8xf32>
    %92 = arith.truncf %91 : vector<8x8xf32> to vector<8x8xbf16>
    %cst_24 = arith.constant dense<0.000000e+00> : vector<8x16xf32>
    %93 = tpu.matmul %92, %78, %cst_24 {dimension_numbers = #tpu.dot_dimension_numbers<[1], [0], [0], [1], [0, 0, 1, 1], [], []>} : vector<8x8xbf16>, vector<8x16xbf16>, vector<8x16xf32> -> vector<8x16xf32>
    %94 = tpu.concatenate %30, %51, %72, %93 in 1 : vector<8x16xf32>, vector<8x16xf32>, vector<8x16xf32>, vector<8x16xf32> -> vector<8x64xf32>
    %95 = arith.truncf %94 : vector<8x64xf32> to vector<8x64xbf16>
    %c0_25 = arith.constant 0 : index
    %c0_26 = arith.constant 0 : index
    %96 = vector.load %arg5[%c0_25, %c0_26] : memref<64x64xbf16, #tpu.memory_space<vmem>>, vector<64x64xbf16>
    %cst_27 = arith.constant dense<0.000000e+00> : vector<8x64xf32>
    %97 = tpu.matmul %95, %96, %cst_27 {dimension_numbers = #tpu.dot_dimension_numbers<[1], [0], [0], [1], [0, 0, 1, 1], [], []>} : vector<8x64xbf16>, vector<64x64xbf16>, vector<8x64xf32> -> vector<8x64xf32>
    %c0_28 = arith.constant 0 : index
    %c0_29 = arith.constant 0 : index
    %98 = vector.load %arg6[%c0_28, %c0_29] : memref<1x64xf32, #tpu.memory_space<vmem>>, vector<1x64xf32>
    %99 = vector.broadcast %98 : vector<1x64xf32> to vector<8x64xf32>
    %100 = arith.addf %97, %99 : vector<8x64xf32>
    %101 = arith.addf %100, %2 : vector<8x64xf32>
    %cst_30 = arith.constant dense<0.000000e+00> : vector<8xf32>
    %102 = vector.multi_reduction <add>, %101, %cst_30 [1] : vector<8x64xf32> to vector<8xf32>
    %103 = vector.shape_cast %102 : vector<8xf32> to vector<8x1xf32>
    %cst_31 = arith.constant 6.400000e+01 : f32
    %104 = vector.broadcast %cst_31 : f32 to vector<8x1xf32>
    %105 = arith.divf %103, %104 : vector<8x1xf32>
    %106 = vector.broadcast %105 : vector<8x1xf32> to vector<8x64xf32>
    %107 = arith.subf %101, %106 : vector<8x64xf32>
    %108 = arith.mulf %107, %107 : vector<8x64xf32>
    %cst_32 = arith.constant dense<0.000000e+00> : vector<8xf32>
    %109 = vector.multi_reduction <add>, %108, %cst_32 [1] : vector<8x64xf32> to vector<8xf32>
    %110 = vector.shape_cast %109 : vector<8xf32> to vector<8x1xf32>
    %cst_33 = arith.constant 6.400000e+01 : f32
    %111 = vector.broadcast %cst_33 : f32 to vector<8x1xf32>
    %112 = arith.divf %110, %111 : vector<8x1xf32>
    %113 = vector.broadcast %105 : vector<8x1xf32> to vector<8x64xf32>
    %114 = arith.subf %101, %113 : vector<8x64xf32>
    %cst_34 = arith.constant 9.99999996E-13 : f32
    %115 = vector.broadcast %cst_34 : f32 to vector<8x1xf32>
    %116 = arith.addf %112, %115 : vector<8x1xf32>
    %117 = math.rsqrt %116 : vector<8x1xf32>
    %118 = vector.broadcast %117 : vector<8x1xf32> to vector<8x64xf32>
    %119 = arith.mulf %114, %118 : vector<8x64xf32>
    %c0_35 = arith.constant 0 : index
    %c0_36 = arith.constant 0 : index
    %120 = vector.load %arg7[%c0_35, %c0_36] : memref<1x64xf32, #tpu.memory_space<vmem>>, vector<1x64xf32>
    %121 = vector.broadcast %120 : vector<1x64xf32> to vector<8x64xf32>
    %122 = arith.mulf %119, %121 : vector<8x64xf32>
    %c0_37 = arith.constant 0 : index
    %c0_38 = arith.constant 0 : index
    %123 = vector.load %arg8[%c0_37, %c0_38] : memref<1x64xf32, #tpu.memory_space<vmem>>, vector<1x64xf32>
    %124 = vector.broadcast %123 : vector<1x64xf32> to vector<8x64xf32>
    %125 = arith.addf %122, %124 : vector<8x64xf32>
    %126 = arith.truncf %125 : vector<8x64xf32> to vector<8x64xbf16>
    %c0_39 = arith.constant 0 : index
    %c0_40 = arith.constant 0 : index
    %127 = vector.load %arg9[%c0_39, %c0_40] : memref<64x256xbf16, #tpu.memory_space<vmem>>, vector<64x256xbf16>
    %cst_41 = arith.constant dense<0.000000e+00> : vector<8x256xf32>
    %128 = tpu.matmul %126, %127, %cst_41 {dimension_numbers = #tpu.dot_dimension_numbers<[1], [0], [0], [1], [0, 0, 1, 1], [], []>} : vector<8x64xbf16>, vector<64x256xbf16>, vector<8x256xf32> -> vector<8x256xf32>
    %c0_42 = arith.constant 0 : index
    %c0_43 = arith.constant 0 : index
    %129 = vector.load %arg10[%c0_42, %c0_43] : memref<1x256xf32, #tpu.memory_space<vmem>>, vector<1x256xf32>
    %130 = vector.broadcast %129 : vector<1x256xf32> to vector<8x256xf32>
    %131 = arith.addf %128, %130 : vector<8x256xf32>
    %cst_44 = arith.constant 5.000000e-01 : f32
    %132 = vector.broadcast %cst_44 : f32 to vector<8x256xf32>
    %133 = arith.mulf %132, %131 : vector<8x256xf32>
    %cst_45 = arith.constant 0.707106769 : f32
    %134 = vector.broadcast %cst_45 : f32 to vector<8x256xf32>
    %135 = arith.mulf %131, %134 : vector<8x256xf32>
    %136 = math.erf %135 : vector<8x256xf32>
    %cst_46 = arith.constant 1.000000e+00 : f32
    %137 = vector.broadcast %cst_46 : f32 to vector<8x256xf32>
    %138 = arith.addf %137, %136 : vector<8x256xf32>
    %139 = arith.mulf %133, %138 : vector<8x256xf32>
    %140 = arith.truncf %139 : vector<8x256xf32> to vector<8x256xbf16>
    %c0_47 = arith.constant 0 : index
    %c0_48 = arith.constant 0 : index
    %141 = vector.load %arg11[%c0_47, %c0_48] : memref<256x64xbf16, #tpu.memory_space<vmem>>, vector<256x64xbf16>
    %cst_49 = arith.constant dense<0.000000e+00> : vector<8x64xf32>
    %142 = tpu.matmul %140, %141, %cst_49 {dimension_numbers = #tpu.dot_dimension_numbers<[1], [0], [0], [1], [0, 0, 1, 1], [], []>} : vector<8x256xbf16>, vector<256x64xbf16>, vector<8x64xf32> -> vector<8x64xf32>
    %c0_50 = arith.constant 0 : index
    %c0_51 = arith.constant 0 : index
    %143 = vector.load %arg12[%c0_50, %c0_51] : memref<1x64xf32, #tpu.memory_space<vmem>>, vector<1x64xf32>
    %144 = vector.broadcast %143 : vector<1x64xf32> to vector<8x64xf32>
    %145 = arith.addf %142, %144 : vector<8x64xf32>
    %146 = arith.addf %145, %125 : vector<8x64xf32>
    %cst_52 = arith.constant dense<0.000000e+00> : vector<8xf32>
    %147 = vector.multi_reduction <add>, %146, %cst_52 [1] : vector<8x64xf32> to vector<8xf32>
    %148 = vector.shape_cast %147 : vector<8xf32> to vector<8x1xf32>
    %cst_53 = arith.constant 6.400000e+01 : f32
    %149 = vector.broadcast %cst_53 : f32 to vector<8x1xf32>
    %150 = arith.divf %148, %149 : vector<8x1xf32>
    %151 = vector.broadcast %150 : vector<8x1xf32> to vector<8x64xf32>
    %152 = arith.subf %146, %151 : vector<8x64xf32>
    %153 = arith.mulf %152, %152 : vector<8x64xf32>
    %cst_54 = arith.constant dense<0.000000e+00> : vector<8xf32>
    %154 = vector.multi_reduction <add>, %153, %cst_54 [1] : vector<8x64xf32> to vector<8xf32>
    %155 = vector.shape_cast %154 : vector<8xf32> to vector<8x1xf32>
    %cst_55 = arith.constant 6.400000e+01 : f32
    %156 = vector.broadcast %cst_55 : f32 to vector<8x1xf32>
    %157 = arith.divf %155, %156 : vector<8x1xf32>
    %158 = vector.broadcast %150 : vector<8x1xf32> to vector<8x64xf32>
    %159 = arith.subf %146, %158 : vector<8x64xf32>
    %cst_56 = arith.constant 9.99999996E-13 : f32
    %160 = vector.broadcast %cst_56 : f32 to vector<8x1xf32>
    %161 = arith.addf %157, %160 : vector<8x1xf32>
    %162 = math.rsqrt %161 : vector<8x1xf32>
    %163 = vector.broadcast %162 : vector<8x1xf32> to vector<8x64xf32>
    %164 = arith.mulf %159, %163 : vector<8x64xf32>
    %c0_57 = arith.constant 0 : index
    %c0_58 = arith.constant 0 : index
    %165 = vector.load %arg13[%c0_57, %c0_58] : memref<1x64xf32, #tpu.memory_space<vmem>>, vector<1x64xf32>
    %166 = vector.broadcast %165 : vector<1x64xf32> to vector<8x64xf32>
    %167 = arith.mulf %164, %166 : vector<8x64xf32>
    %c0_59 = arith.constant 0 : index
    %c0_60 = arith.constant 0 : index
    %168 = vector.load %arg14[%c0_59, %c0_60] : memref<1x64xf32, #tpu.memory_space<vmem>>, vector<1x64xf32>
    %169 = vector.broadcast %168 : vector<1x64xf32> to vector<8x64xf32>
    %170 = arith.addf %167, %169 : vector<8x64xf32>
    %171 = arith.truncf %170 : vector<8x64xf32> to vector<8x64xbf16>
    %c0_61 = arith.constant 0 : index
    %c0_62 = arith.constant 0 : index
    %c0_63 = arith.constant 0 : index
    %172 = vector.load %arg15[%c0_61, %c0_62, %c0_63] : memref<1x8x64xbf16, #tpu.memory_space<vmem>>, vector<1x8x64xbf16>
    %173 = vector.shape_cast %172 : vector<1x8x64xbf16> to vector<8x64xbf16>
    %174 = vector.shape_cast %171 : vector<8x64xbf16> to vector<1x8x64xbf16>
    tpu.vector_store %arg15[%c0_61, %c0_62, %c0_63], %174 {strides = array<i32>} : memref<1x8x64xbf16, #tpu.memory_space<vmem>>, vector<1x8x64xbf16>,
    return
  }
  func.func @transform_0(%arg0: i32) -> (i32, i32, i32) {
    %c0_i32 = arith.constant 0 : i32
    %c0_i32_0 = arith.constant 0 : i32
    %c0_i32_1 = arith.constant 0 : i32
    return %arg0, %c0_i32, %c0_i32_0 : i32, i32, i32
  }
  func.func @transform_1(%arg0: i32) -> (i32, i32, i32) {
    %c0_i32 = arith.constant 0 : i32
    %c0_i32_0 = arith.constant 0 : i32
    %c0_i32_1 = arith.constant 0 : i32
    return %arg0, %c0_i32, %c0_i32_0 : i32, i32, i32
  }
  func.func @transform_2(%arg0: i32) -> (i32, i32) {
    %c0_i32 = arith.constant 0 : i32
    %c0_i32_0 = arith.constant 0 : i32
    %c0_i32_1 = arith.constant 0 : i32
    return %c0_i32, %c0_i32_0 : i32, i32
  }
  func.func @transform_3(%arg0: i32) -> (i32, i32) {
    %c0_i32 = arith.constant 0 : i32
    %c0_i32_0 = arith.constant 0 : i32
    %c0_i32_1 = arith.constant 0 : i32
    return %c0_i32, %c0_i32_0 : i32, i32
  }
  func.func @transform_4(%arg0: i32) -> (i32, i32) {
    %c0_i32 = arith.constant 0 : i32
    %c0_i32_0 = arith.constant 0 : i32
    %c0_i32_1 = arith.constant 0 : i32
    return %c0_i32, %c0_i32_0 : i32, i32
  }
  func.func @transform_5(%arg0: i32) -> (i32, i32) {
    %c0_i32 = arith.constant 0 : i32
    %c0_i32_0 = arith.constant 0 : i32
    %c0_i32_1 = arith.constant 0 : i32
    return %c0_i32, %c0_i32_0 : i32, i32
  }
  func.func @transform_6(%arg0: i32) -> (i32, i32) {
    %c0_i32 = arith.constant 0 : i32
    %c0_i32_0 = arith.constant 0 : i32
    %c0_i32_1 = arith.constant 0 : i32
    return %c0_i32, %c0_i32_0 : i32, i32
  }
  func.func @transform_7(%arg0: i32) -> (i32, i32) {
    %c0_i32 = arith.constant 0 : i32
    %c0_i32_0 = arith.constant 0 : i32
    %c0_i32_1 = arith.constant 0 : i32
    return %c0_i32, %c0_i32_0 : i32, i32
  }
  func.func @transform_8(%arg0: i32) -> (i32, i32) {
    %c0_i32 = arith.constant 0 : i32
    %c0_i32_0 = arith.constant 0 : i32
    %c0_i32_1 = arith.constant 0 : i32
    return %c0_i32, %c0_i32_0 : i32, i32
  }
  func.func @transform_9(%arg0: i32) -> (i32, i32) {
    %c0_i32 = arith.constant 0 : i32
    %c0_i32_0 = arith.constant 0 : i32
    %c0_i32_1 = arith.constant 0 : i32
    return %c0_i32, %c0_i32_0 : i32, i32
  }
  func.func @transform_10(%arg0: i32) -> (i32, i32) {
    %c0_i32 = arith.constant 0 : i32
    %c0_i32_0 = arith.constant 0 : i32
    %c0_i32_1 = arith.constant 0 : i32
    return %c0_i32, %c0_i32_0 : i32, i32
  }
  func.func @transform_11(%arg0: i32) -> (i32, i32) {
    %c0_i32 = arith.constant 0 : i32
    %c0_i32_0 = arith.constant 0 : i32
    %c0_i32_1 = arith.constant 0 : i32
    return %c0_i32, %c0_i32_0 : i32, i32
  }
  func.func @transform_12(%arg0: i32) -> (i32, i32) {
    %c0_i32 = arith.constant 0 : i32
    %c0_i32_0 = arith.constant 0 : i32
    %c0_i32_1 = arith.constant 0 : i32
    return %c0_i32, %c0_i32_0 : i32, i32
  }
  func.func @transform_13(%arg0: i32) -> (i32, i32) {
    %c0_i32 = arith.constant 0 : i32
    %c0_i32_0 = arith.constant 0 : i32
    %c0_i32_1 = arith.constant 0 : i32
    return %c0_i32, %c0_i32_0 : i32, i32
  }
  func.func @transform_14(%arg0: i32) -> (i32, i32, i32) {
    %c0_i32 = arith.constant 0 : i32
    %c0_i32_0 = arith.constant 0 : i32
    %c0_i32_1 = arith.constant 0 : i32
    return %arg0, %c0_i32, %c0_i32_0 : i32, i32, i32
  }
}

</mosaic_0001>

<bundles_post_ra>
// kernel: _lambda_.7
= control target key start
LH: loop header
LB: loop body
LE: loop exit
PB: predicated region body
PF: predicated region fallthrough
CT: control target
= control target key end

     0   :  { %v143_v0 = vmov 0.0   ;;  %vm144_vm0 = vmmov 0   ;;  %vm61_vm1 = vcmask 523264   ;;  %s189_s1 = inlined_call_operand.vmem [shape: bf16[64,128], index: 1, kind: input, shape index: {}]   ;;  %s190_s0 = inlined_call_operand.vmem [shape: bf16[16,64], index: 0, kind: input, shape index: {}]   ;;  %s191_s2 = inlined_call_operand.vmem [shape: f32[1,128], index: 2, kind: input, shape index: {}]   ;;  %s192_s3 = inlined_call_operand.vmem [shape: f32[16,128], index: 3, kind: output, shape index: {}]  }
   0x1   :  { %124 = vmatprep.subr.bf16.mxu0 %v143_v0  ;;  %v138_v1 = vld [vmem:[%s189_s1] sm:$0xff]   ;;  %132 = vmatprep.mubr.msk.bf16.mxu0 %vm144_vm0, %v143_v0  ;;  %v139_v2 = vld [vmem:[%s189_s1 + $0x8] sm:$0xff]   ;;  %v140_v3 = vld [vmem:[%s189_s1 + $0x10] sm:$0xff]  }
   0x2   :  { %125 = vmatpush3.bf16.msra.mxu0 %v138_v1  ;;  %v141_v4 = vld [vmem:[%s189_s1 + $0x18] sm:$0xff]   ;;  %v142_v5 = vld [vmem:[%s190_s0] sm:$0xff]  }
   0x3   :  { %126 = vmatprep.subr.bf16.mxu0 %v143_v0  ;;  %v112_v6 = vld [vmem:[%s191_s2] ss:$0 sm:$0xff] }
   0x6   :  { %127 = vmatpush3.bf16.msra.mxu0 %v139_v2 }
   0x7   :  { %128 = vmatprep.subr.bf16.mxu0 %v143_v0 }
   0xa   :  { %129 = vmatpush3.bf16.msra.mxu0 %v140_v3 }
   0xb   :  { %130 = vmatprep.subr.bf16.mxu0 %v143_v0 }
   0xe   :  { %131 = vmatpush3.bf16.msra.mxu0 %v141_v4 }
  0x11   :  { %133 = vmatmul.mubr.msk.bf16.vlgmr.msra.gmra.mrb[0].mxu0 %vm61_vm1, %v142_v5 }
  0xe4   :  { %v99_v7 = vpop.f32.mrb[0].mxu0 }
  0xe5   :  { %v100_v8 = vadd.f32 %v112_v6, %v99_v7  ;;  %v134_v9 = vpop.f32.mrb[1].mxu0 }
  0xe6   :  { %v102_v10 = vpop.f32.mrb[2].mxu0 }
  0xe7   :  { %106 = vst [vmem:[%s192_s3] sm:$0xff] %v100_v8  ;;  %v103_v11 = vadd.f32 %v112_v6, %v102_v10  ;;  %v135_v12 = vpop.f32.mrb[3].mxu0 }
  0xe9   :  { %107 = vst [vmem:[%s192_s3 + $0x8] sm:$0xff] %v103_v11 }

// kernel: _lambda_.4
= control target key start
LH: loop header
LB: loop body
LE: loop exit
PB: predicated region body
PF: predicated region fallthrough
CT: control target
= control target key end

     0   :  { %vm16_vm0 = vcmask 523264   ;;  %vm70_vm1 = vcmask 519168   ;;  %s129_s0 = inlined_call_operand.vmem [shape: f32[16,64], index: 0, kind: input, shape index: {}]   ;;  %s130_s1 = inlined_call_operand.vmem [shape: f32[1,64], index: 1, kind: input, shape index: {}]   ;;  %s131_s2 = inlined_call_operand.vmem [shape: f32[1,64], index: 2, kind: input, shape index: {}]   ;;  %s132_s3 = inlined_call_operand.vmem [shape: bf16[16,64], index: 3, kind: output, shape index: {}]  }
   0x1   :  { %v14_v0 = vld [vmem:[%s129_s0] sm:$0xff]  ;;  %v15_v1 = vld [vmem:[%s129_s0 + $0x8] sm:$0xff] }
   0x2   :  { %v17_v2 = vsel %vm16_vm0, %v14_v0, 0.0  ;;  %v20_v3 = vsel %vm16_vm0, %v15_v1, 0.0  ;;  %v77_v21 = vld [vmem:[%s130_s1] ss:$0 sm:$0xff] }
   0x3   :  { %18 = vadd.xlane.f32.xlu0 %v17_v2  ;;  %v78_v23 = vld [vmem:[%s131_s2] ss:$0 sm:$0xff] }
   0x7   :  { %21 = vadd.xlane.f32.xlu0 %v20_v3 }
  0x90   :  { %v19_v4 = vpop.xlane.xlu0 %18 }
  0x91   :  { %v24_v5 = vmul.f32 0.015625, %v19_v4 }
  0x93   :  { %v26_v6 = vsub.f32 %v14_v0, %v24_v5 }
  0x94   :  { %v22_v7 = vpop.xlane.xlu0 %21 }
  0x95   :  { %v25_v8 = vmul.f32 0.015625, %v22_v7  ;;  %v28_v9 = vmul.f32 %v26_v6, %v26_v6 }
  0x97   :  { %v27_v10 = vsub.f32 %v15_v1, %v25_v8  ;;  %v30_v11 = vsel %vm16_vm0, %v28_v9, 0.0 }
  0x98   :  { %31 = vadd.xlane.f32.xlu1 %v30_v11 }
  0x99   :  { %v29_v12 = vmul.f32 %v27_v10, %v27_v10 }
  0x9b   :  { %v33_v13 = vsel %vm16_vm0, %v29_v12, 0.0 }
  0x9c   :  { %34 = vadd.xlane.f32.xlu1 %v33_v13 }
 0x125   :  { %v32_v14 = vpop.xlane.xlu1 %31 }
 0x126   :  { %v36_v15 = vmul.f32 0.015625, %v32_v14 }
 0x128   :  { %v38_v16 = vadd.f32 1e-12, %v36_v15 }
 0x129   :  { %v35_v17 = vpop.xlane.xlu1 %34 }
 0x12a   :  { %83 = vrsqrt.f32 %v38_v16  ;;  %v37_v18 = vmul.f32 0.015625, %v35_v17 }
 0x12c   :  { %v39_v19 = vadd.f32 1e-12, %v37_v18 }
 0x12e   :  { %85 = vrsqrt.f32 %v39_v19 }
 0x134   :  { %v84_v20 = vpop.eup %83 }
 0x135   :  { %v42_v22 = vmul.f32 %v84_v20, %v26_v6 }
 0x137   :  { %v51_v24 = vmul.f32 %v77_v21, %v42_v22 }
 0x138   :  { %v86_v25 = vpop.eup %85 }
 0x139   :  { %v60_v26 = vadd.f32 %v78_v23, %v51_v24  ;;  %v43_v27 = vmul.f32 %v86_v25, %v27_v10 }
 0x13b   :  { %v81_v28 = vpack.c.bf16 %v60_v26, %v60_v26  ;;  %v52_v29 = vmul.f32 %v77_v21, %v43_v27 }
 0x13d   :  { %71 = vst.msk [vmem:[%s132_s3] sm:$0xf] %vm70_vm1, %v81_v28  ;;  %v61_v30 = vadd.f32 %v78_v23, %v52_v29 }
 0x13f   :  { %v82_v31 = vpack.c.bf16 %v61_v30, %v61_v30 }
 0x141   :  { %72 = vst.msk [vmem:[%s132_s3 + $0x4] sm:$0xf] %vm70_vm1, %v82_v31 }

// kernel: _lambda_.5
= control target key start
LH: loop header
LB: loop body
LE: loop exit
PB: predicated region body
PF: predicated region fallthrough
CT: control target
= control target key end

     0   :  { %s1898_s29 = smov 0   ;;  %s2156_s0 = inlined_call_operand.vmem [shape: bf16[2,8,64], index: 0, kind: input, shape index: {}]   ;;  %s2157_s1 = inlined_call_operand.vmem [shape: f32[2,1,8], index: 1, kind: input, shape index: {}]   ;;  %s2158_s2 = inlined_call_operand.vmem [shape: bf16[64,192], index: 2, kind: input, shape index: {}]   ;;  %s2159_s3 = inlined_call_operand.vmem [shape: f32[1,192], index: 3, kind: input, shape index: {}]   ;;  %s2160_s4 = inlined_call_operand.vmem [shape: bf16[64,64], index: 4, kind: input, shape index: {}]   ;;  %s2161_s5 = inlined_call_operand.vmem [shape: f32[1,64], index: 5, kind: input, shape index: {}]   ;;  %s2162_s6 = inlined_call_operand.vmem [shape: f32[1,64], index: 6, kind: input, shape index: {}]   ;;  %s2163_s7 = inlined_call_operand.vmem [shape: f32[1,64], index: 7, kind: input, shape index: {}]   ;;  %s2164_s8 = inlined_call_operand.vmem [shape: bf16[64,256], index: 8, kind: input, shape index: {}]   ;;  %s2165_s9 = inlined_call_operand.vmem [shape: f32[1,256], index: 9, kind: input, shape index: {}]   ;;  %s2166_s10 = inlined_call_operand.vmem [shape: bf16[256,64], index: 10, kind: input, shape index: {}]   ;;  %s2167_s11 = inlined_call_operand.vmem [shape: f32[1,64], index: 11, kind: input, shape index: {}]   ;;  %s2168_s12 = inlined_call_operand.vmem [shape: f32[1,64], index: 12, kind: input, shape index: {}]   ;;  %s2169_s13 = inlined_call_operand.vmem [shape: f32[1,64], index: 13, kind: input, shape index: {}]   ;;  %s2170_s14 = inlined_call_operand.vmem [shape: bf16[2,8,64], index: 14, kind: output, shape index: {}]  }
   0x1 LB: > { %s1553_s30 = sadd.s32 4294967295, %s1811_s29   ;;  %p1557_p0 = scmp.ge.s32.totalorder %s1811_s29, 1  ;;  %s1811_s29 = sphi %s1898_s29, %s24_s29  }
   0x2   : > { %p419_p1 = scmp.lt.s32.totalorder %s1811_s29, 3 }
   0x4   : > { %p420_p2 = pnand %p1557_p0, %p419_p1 }
   0x5   : > { %v1737_v0 = vld [vmem:[%s2158_s2 + $0x4] ss:$8 sps:$4 sm:$0xff] (!%p420_p2)   ;;  %p466_p3 = scmp.lt.s32.totalorder (!%p420_p2), %s1553_s30, 1  ;;  %v1739_v1 = vld [vmem:[%s2158_s2] ss:$8 sps:$4 sm:$0xff] (!%p420_p2)   ;;  %v1813_v2 = vmov (!%p420_p2), 0   ;;  %v491_v10 = vlaneseq (!%p420_p2) }
   0x6   : > { %423 = sbr.rel (%p420_p2) target bundleno = 2579 (0xa13), region = 76  ;;  %577 = vmatprep.mubr.bf16.mxu1 (!%p420_p2), %v1813_v2  ;;  %545 = vmatprep.subr.bf16.mxu1 (!%p420_p2), %v1737_v0  ;;  %v1740_v3 = vld [vmem:[%s2158_s2 + $0x14] ss:$8 sps:$4 sm:$0xff] (!%p420_p2)   ;;  %v1742_v4 = vld [vmem:[%s2158_s2 + $0x10] ss:$8 sps:$4 sm:$0xff] (!%p420_p2)   ;;  %vm541_vm0 = vcmask (!%p420_p2), 523264  }
   0x7   : > { %546 = vmatpush1.bf16.msra.mxu1 (!%p420_p2), %v1739_v1  ;;  %v1743_v5 = vld [vmem:[%s2158_s2 + $0x24] ss:$8 sps:$4 sm:$0xff] (!%p420_p2)   ;;  %v1745_v6 = vld [vmem:[%s2158_s2 + $0x20] ss:$8 sps:$4 sm:$0xff] (!%p420_p2)   ;;  %v1746_v7 = vld [vmem:[%s2158_s2 + $0x34] ss:$8 sps:$4 sm:$0xff] (!%p420_p2)  }
   0x8   : > { %547 = vmatprep.subr.bf16.mxu1 (!%p420_p2), %v1740_v3  ;;  %v1748_v8 = vld [vmem:[%s2158_s2 + $0x30] ss:$8 sps:$4 sm:$0xff] (!%p420_p2)   ;;  %v1943_v11 = vshrl.u32 (!%p420_p2), %v491_v10, 7  ;;  %v1814_v12 = vmov (!%p420_p2), 0.0   ;;  %v489_v14 = vld [vmem:[%s2159_s3] sm:$0x3] (!%p420_p2) }
   0x9   : > { %1671 = vmatprep.subr.bf16.mxu0 (!%p420_p2), %v1814_v12  ;;  %vm1815_vm1 = vmmov (!%p420_p2), 0   ;;  %s1816_s23 = smov (!%p420_p2), 112   ;;  %s1817_s24 = smov (!%p420_p2), 64   ;;  %vm597_vm2 = vcmask (!%p420_p2), 130048   ;;  %vm660_vm3 = vcmask (!%p420_p2), 1043456   ;;  %vm644_vm4 = vcmask (!%p420_p2), 64512  }
   0xa   : > { %v493_v13 = vsub.s32 (!%p420_p2), 0, %v1943_v11  ;;  %1673 = vmatprep.mubr.msk.bf16.mxu0 (!%p420_p2), %vm1815_vm1, %v1814_v12  ;;  %s1818_s25 = smov (!%p420_p2), 32   ;;  %s1819_s26 = smov (!%p420_p2), 48   ;;  %v497_v22 = vsub.s32 (!%p420_p2), 1, %v1943_v11  ;;  %vm1048_vm5 = vcmask (!%p420_p2), 261120   ;;  %vm1050_vm6 = vcmask (!%p420_p2), 392192  }
   0xb   : > { %548 = vmatpush1.bf16.msra.mxu1 (!%p420_p2), %v1742_v4  ;;  %s1820_s27 = smov (!%p420_p2), 16   ;;  %s1821_s28 = smov (!%p420_p2), 96   ;;  %vm1489_vm7 = vcmask (!%p420_p2), 519168  }
   0xc   : > { %549 = vmatprep.subr.bf16.mxu1 (!%p420_p2), %v1743_v5  ;;  %v494_v15 = vrot.slane (!%p420_p2), %v489_v14, %v493_v13  ;;  %s1822_s16 = smov (!%p420_p2), 80   ;;  %v498_v23 = vrot.slane (!%p420_p2), %v489_v14, %v497_v22 }
   0xd   : > { %s2172_s30 = smov (!%p466_p3, %s1553_s30), 1 }
   0xe   : > { %s1558_s15 = sshll.u32 %s2172_s30, 2  ;;  %s472_s19 = scalar_lea.vmem %s2157_s1, %s2172_s30 }
   0xf   : > { %s469_s20 = scalar_lea.vmem %s2156_s0, %s1558_s15  ;;  %550 = vmatpush1.bf16.msra.mxu1 %v1745_v6  ;;  %v1569_v38 = vld [vmem:[%s472_s19] ss:$0 sm:$0xff] }
  0x10   : > { %551 = vmatprep.subr.bf16.mxu1 %v1746_v7  ;;  %v1939_v9 = vld [vmem:[%s469_s20] sm:$0xf] }
  0x13   : > { %552 = vmatpush1.bf16.msra.mxu1 %v1748_v8 }
  0x14   : > { %1659 = vmatprep.subr.bf16.mxu1 %v1814_v12 }
  0x16   : > { %1568 = vmatmul.mubr.msk.bf16.vlgmr.msra.gmra.mrb[0].mxu1 %vm541_vm0, %v1939_v9 }
  0x17   : > { %1661 = vmatprep.mubr.msk.bf16.mxu1 %vm1815_vm1, %v1814_v12 }
  0xe9   : > { %v579_v16 = vpop.f32.mrb[0].mxu1 }
  0xea   : > { %v580_v17 = vadd.f32 %v579_v16, %v494_v15  ;;  %v581_v18 = vpop.f32.mrb[1].mxu1 }
  0xeb   : > { %v583_v19 = vpop.f32.mrb[2].mxu1  ;;  %v582_v25 = vadd.f32 %v581_v18, %v498_v23 }
  0xec   : > { %v586_v20 = vpack.c.bf16 %v580_v17, %v580_v17  ;;  %v584_v21 = vpop.f32.mrb[3].mxu1 }
  0xed   : > { %v1968_v29 = vpack.c.bf16 %v582_v25, %v582_v25 }
  0xee   : > { %704 = vrot.lane.b32.xlu1 %v586_v20, %s1816_s23  ;;  %595 = vrot.lane.b32.xlu0 %v586_v20, %s1817_s24 }
  0xef   : > { %v662_v31 = vsel %vm660_vm3, %v1968_v29, 0 }
  0xf2   : > { %817 = vrot.lane.b32.xlu1 %v586_v20, %s1818_s25  ;;  %706 = vrot.lane.b32.xlu0 %v586_v20, %s1819_s26 }
  0xf6   : > { %927 = vrot.lane.b32.xlu1 %v586_v20, %s1820_s27  ;;  %815 = vrot.lane.b32.xlu0 %v586_v20, %s1821_s28 }
  0xfa   : > { %925 = vrot.lane.b32.xlu0 %v586_v20, %s1822_s16 }
 0x160   : > { %v596_v24 = vpop.permute.xlu0 %595  ;;  %v705_v27 = vpop.permute.xlu1 %704 }
 0x161   : > { %v602_v26 = vsel %vm597_vm2, %v596_v24, 0 }
 0x162   : > { %1660 = vmatpush3.bf16.xpose.msra.mxu1 %v602_v26 }
 0x163   : > { %1665 = vmatprep.subr.bf16.mxu1 %v1814_v12 }
 0x164   : > { %v707_v28 = vpop.permute.xlu0 %706  ;;  %v818_v32 = vpop.permute.xlu1 %817 }
 0x165   : > { %v712_v30 = vsel %vm597_vm2, %v707_v28, 0  ;;  %v823_v33 = vsel %vm597_vm2, %v818_v32, 0 }
 0x166   : > { %1672 = vmatpush3.bf16.xpose.msra.mxu0 %v712_v30 }
 0x167   : > { %1683 = vmatprep.subr.bf16.mxu0 %v1814_v12 }
 0x168   : > { %v928_v34 = vpop.permute.xlu1 %927  ;;  %v816_v35 = vpop.permute.xlu0 %815 }
 0x169   : > { %1662 = vmatmul.mubr.msk.bf16.vlgmr.msra.gmra.mrb[4].mxu1 %vm597_vm2, %v586_v20  ;;  %v933_v36 = vsel %vm597_vm2, %v928_v34, 0 }
 0x16a   : > { %1666 = vmatpush3.bf16.msra.mxu1 %v662_v31  ;;  %1667 = vmatprep.mubr.msk.bf16.mxu1 %vm1815_vm1, %v1814_v12 }
 0x16b   : > { %1677 = vmatprep.subr.bf16.mxu1 %v1814_v12 }
 0x16c   : > { %v926_v37 = vpop.permute.xlu0 %925 }
 0x16d   : > { %1674 = vmatmul.mubr.msk.bf16.vlgmr.msra.gmra.mrb[0].mxu0 %vm597_vm2, %v705_v27 }
 0x16e   : > { %1684 = vmatpush3.bf16.xpose.msra.mxu0 %v823_v33  ;;  %1685 = vmatprep.mubr.msk.bf16.mxu0 %vm1815_vm1, %v1814_v12 }
 0x16f   : > { %1695 = vmatprep.subr.bf16.mxu0 %v1814_v12 }
 0x175   : > { %1686 = vmatmul.mubr.msk.bf16.vlgmr.msra.gmra.mrb[4].mxu0 %vm597_vm2, %v816_v35 }
 0x176   : > { %1696 = vmatpush3.bf16.xpose.msra.mxu0 %v933_v36  ;;  %1697 = vmatprep.mubr.msk.bf16.mxu0 %vm1815_vm1, %v1814_v12 }
 0x177   : > { %1707 = vmatprep.subr.bf16.mxu0 %v1814_v12 }
 0x17d   : > { %1698 = vmatmul.mubr.msk.bf16.vlgmr.msra.gmra.mrb[8].mxu0 %vm597_vm2, %v926_v37 }
 0x17e   : > { %1715 = vmatprep.mubr.msk.bf16.mxu0 %vm1815_vm1, %v1814_v12 }
 0x23c   : > { %v638_v39 = vpop.f32.mrb[4].mxu1 }
 0x23d   : > { %v639_v40 = vadd.f32 %v1569_v38, %v638_v39  ;;  %v1663_v41 = vpop.f32.mrb[5].mxu1 }
 0x23e   : > { %v641_v42 = vpop.f32.mrb[6].mxu1 }
 0x23f   : > { %v1664_v43 = vpop.f32.mrb[7].mxu1  ;;  %v645_v44 = vsel %vm644_vm4, %v639_v40, -inf }
 0x240   : > { %646 = vmax.xlane.f32.xlu1 %v645_v44  ;;  %v748_v45 = vpop.f32.mrb[0].mxu0 }
 0x241   : > { %v749_v46 = vadd.f32 %v1569_v38, %v748_v45  ;;  %v1675_v47 = vpop.f32.mrb[1].mxu0 }
 0x242   : > { %v751_v48 = vpop.f32.mrb[2].mxu0 }
 0x243   : > { %v1676_v49 = vpop.f32.mrb[3].mxu0  ;;  %v754_v50 = vsel %vm644_vm4, %v749_v46, -inf }
 0x244   : > { %755 = vmax.xlane.f32.xlu0 %v754_v50 }
 0x248   : > { %v859_v51 = vpop.f32.mrb[4].mxu0 }
 0x249   : > { %v860_v52 = vadd.f32 %v1569_v38, %v859_v51  ;;  %v1687_v53 = vpop.f32.mrb[5].mxu0  ;;  %v1749_v51 = vld [vmem:[%s2160_s4] sm:$0xff]  }
 0x24a   : > { %v862_v54 = vpop.f32.mrb[6].mxu0  ;;  %1708 = vmatpush3.bf16.msra.mxu0 %v1749_v51  ;;  %v1771_v51 = vld [vmem:[%s2166_s10 + $0x58] sm:$0xff]  }
 0x24b   : > { %v1688_v55 = vpop.f32.mrb[7].mxu0  ;;  %v865_v56 = vsel %vm644_vm4, %v860_v52, -inf  ;;  %1709 = vmatprep.subr.bf16.mxu0 %v1814_v12 }
 0x24c   : > { %866 = vmax.xlane.f32.xlu0 %v865_v56  ;;  %v1751_v55 = vld [vmem:[%s2160_s4 + $0x10] sm:$0xff]  }
 0x250   : > { %v969_v57 = vpop.f32.mrb[8].mxu0 }
 0x251   : > { %v970_v58 = vadd.f32 %v1569_v38, %v969_v57  ;;  %v1699_v59 = vpop.f32.mrb[9].mxu0 }
 0x252   : > { %v972_v60 = vpop.f32.mrb[10].mxu0 }
 0x253   : > { %v1700_v61 = vpop.f32.mrb[11].mxu0  ;;  %v975_v62 = vsel %vm644_vm4, %v970_v58, -inf }
 0x254   : > { %976 = vmax.xlane.f32.xlu1 %v975_v62  ;;  %v1752_v61 = vld [vmem:[%s2160_s4 + $0x18] sm:$0xff]  }
 0x2cd   : > { %v647_v63 = vpop.xlane.xlu1 %646 }
 0x2ce   : > { %v648_v0 = vsub.f32 %v639_v40, %v647_v63 }
 0x2d0   : > { %v649_v1 = vmul.f32 1.442695, %v648_v0 }
 0x2d1   : > { %v756_v3 = vpop.xlane.xlu0 %755 }
 0x2d2   : > { %1781 = vpow2.f32 %v649_v1  ;;  %v757_v4 = vsub.f32 %v749_v46, %v756_v3 }
 0x2d4   : > { %v758_v5 = vmul.f32 1.442695, %v757_v4 }
 0x2d6   : > { %1783 = vpow2.f32 %v758_v5 }
 0x2d9   : > { %v867_v6 = vpop.xlane.xlu0 %866 }
 0x2da   : > { %v868_v7 = vsub.f32 %v860_v52, %v867_v6  ;;  %v1750_v52 = vld [vmem:[%s2160_s4 + $0x8] sm:$0xff]  }
 0x2db   : > { %1710 = vmatpush3.bf16.msra.mxu0 %v1750_v52  ;;  %v1772_v52 = vld [vmem:[%s2166_s10 + $0x18] sm:$0xff]  }
 0x2dc   : > { %v1782_v8 = vpop.eup %1781  ;;  %v869_v10 = vmul.f32 1.442695, %v868_v7  ;;  %1711 = vmatprep.subr.bf16.mxu0 %v1814_v12 }
 0x2dd   : > { %v651_v14 = vsel %vm644_vm4, %v1782_v8, 0.0 }
 0x2de   : > { %1785 = vpow2.f32 %v869_v10  ;;  %652 = vadd.xlane.f32.xlu0 %v651_v14  ;;  %v1578_v10 = vld [vmem:[%s2161_s5] ss:$0 sm:$0xff]  ;;  %v479_v14 = vunpack.c.l.bf16 %v1939_v9  ;;  %v1755_v9 = vld [vmem:[%s2164_s8 + $0x4] ss:$8 sps:$4 sm:$0xff]  }
 0x2df   : > { %1712 = vmatpush3.bf16.msra.mxu0 %v1751_v55  ;;  %v1776_v55 = vld [vmem:[%s2166_s10 + $0x28] sm:$0xff]  }
 0x2e0   : > { %v1784_v15 = vpop.eup %1783  ;;  %1713 = vmatprep.subr.bf16.mxu0 %v1814_v12 }
 0x2e1   : > { %v760_v16 = vsel %vm644_vm4, %v1784_v15, 0.0  ;;  %v977_v19 = vpop.xlane.xlu1 %976 }
 0x2e2   : > { %761 = vadd.xlane.f32.xlu1 %v760_v16  ;;  %v978_v20 = vsub.f32 %v970_v58, %v977_v19 }
 0x2e3   : > { %1714 = vmatpush3.bf16.msra.mxu0 %v1752_v61 }
 0x2e4   : > { %v979_v21 = vmul.f32 1.442695, %v978_v20 }
 0x2e6   : > { %1787 = vpow2.f32 %v979_v21 }
 0x2e8   : > { %v1786_v17 = vpop.eup %1785 }
 0x2e9   : > { %v871_v18 = vsel %vm644_vm4, %v1786_v17, 0.0 }
 0x2ea   : > { %872 = vadd.xlane.f32.xlu0 %v871_v18 }
 0x2f0   : > { %v1788_v23 = vpop.eup %1787 }
 0x2f1   : > { %v981_v24 = vsel %vm644_vm4, %v1788_v23, 0.0 }
 0x2f3   : > { %877 = vrot.lane.b32.xlu1 %v1968_v29, %s1821_s28 }
 0x300   : > { %767 = vrot.lane.b32.xlu0 %v1968_v29, %s1816_s23 }
 0x317   : > { %982 = vadd.xlane.f32.xlu1 %v981_v24 }
 0x328   : > { %987 = vrot.lane.b32.xlu1 %v1968_v29, %s1822_s16  ;;  %s476_s16 = scalar_lea.vmem %s2170_s14, %s1558_s15 }
 0x36b   : > { %v653_v25 = vpop.xlane.xlu0 %652 }
 0x36c   : > { %1789 = vrcp.f32 %v653_v25 }
 0x36f   : > { %v762_v26 = vpop.xlane.xlu1 %761 }
 0x370   : > { %1791 = vrcp.f32 %v762_v26 }
 0x373   : > { %v878_v29 = vpop.permute.xlu1 %877 }
 0x374   : > { %v883_v38 = vsel %vm660_vm3, %v878_v29, 0  ;;  %v1765_v29 = vld [vmem:[%s2166_s10 + $0x40] sm:$0xff]  }
 0x375   : > { %1637 = vmatprep.subr.bf16.mxu0 %v1765_v29 }
 0x376   : > { %v1790_v27 = vpop.eup %1789 }
 0x377   : > { %v655_v28 = vmul.f32 %v1790_v27, %v1782_v8  ;;  %v873_v30 = vpop.xlane.xlu0 %872 }
 0x378   : > { %1793 = vrcp.f32 %v873_v30  ;;  %v1758_v30 = vld [vmem:[%s2164_s8 + $0x14] ss:$8 sps:$4 sm:$0xff]  }
 0x379   : > { %v656_v31 = vpack.c.bf16 %v655_v28, %v655_v28  ;;  %v1753_v28 = vld [vmem:[%s2164_s8] ss:$8 sps:$4 sm:$0xff]  }
 0x37a   : > { %v1792_v32 = vpop.eup %1791 }
 0x37b   : > { %1668 = vmatmul.mubr.msk.bf16.vlgmr.msra.gmra.mrb[8].mxu1 %vm644_vm4, %v656_v31  ;;  %v768_v33 = vpop.permute.xlu0 %767  ;;  %v764_v35 = vmul.f32 %v1792_v32, %v1784_v15  ;;  %v1756_v31 = vld [vmem:[%s2164_s8 + $0x10] ss:$8 sps:$4 sm:$0xff]   ;;  %v1761_v32 = vld [vmem:[%s2164_s8 + $0x24] ss:$8 sps:$4 sm:$0xff]  }
 0x37c   : > { %v773_v34 = vsel %vm660_vm3, %v768_v33, 0  ;;  %1679 = vmatprep.mubr.msk.bf16.mxu1 %vm1815_vm1, %v1814_v12  ;;  %v1759_v33 = vld [vmem:[%s2164_s8 + $0x20] ss:$8 sps:$4 sm:$0xff]  }
 0x37d   : > { %1678 = vmatpush3.bf16.msra.mxu1 %v773_v34  ;;  %v765_v36 = vpack.c.bf16 %v764_v35, %v764_v35  ;;  %v1762_v34 = vld [vmem:[%s2164_s8 + $0x30] ss:$8 sps:$4 sm:$0xff]   ;;  %v1764_v35 = vld [vmem:[%s2164_s8 + $0x34] ss:$8 sps:$4 sm:$0xff]  }
 0x37e   : > { %1689 = vmatprep.subr.bf16.mxu1 %v1814_v12 }
 0x382   : > { %v1794_v37 = vpop.eup %1793 }
 0x383   : > { %1680 = vmatmul.mubr.msk.bf16.vlgmr.msra.gmra.mrb[12].mxu1 %vm644_vm4, %v765_v36  ;;  %v875_v39 = vmul.f32 %v1794_v37, %v1786_v17  ;;  %v1766_v36 = vld [vmem:[%s2166_s10] sm:$0xff]   ;;  %v1767_v37 = vld [vmem:[%s2166_s10 + $0x48] sm:$0xff]  }
 0x384   : > { %1690 = vmatpush3.bf16.msra.mxu1 %v883_v38  ;;  %1691 = vmatprep.mubr.msk.bf16.mxu1 %vm1815_vm1, %v1814_v12  ;;  %v1768_v38 = vld [vmem:[%s2166_s10 + $0x8] sm:$0xff]  }
 0x385   : > { %1701 = vmatprep.subr.bf16.mxu1 %v1814_v12  ;;  %v876_v40 = vpack.c.bf16 %v875_v39, %v875_v39 }
 0x38b   : > { %1692 = vmatmul.mubr.msk.bf16.vlgmr.msra.gmra.mrb[16].mxu1 %vm644_vm4, %v876_v40 }
 0x38c   : > { %1703 = vmatprep.mubr.msk.bf16.mxu1 %vm1815_vm1, %v1814_v12 }
 0x3a4   : > { %v983_v41 = vpop.xlane.xlu1 %982 }
 0x3a5   : > { %1795 = vrcp.f32 %v983_v41 }
 0x3a8   : > { %v988_v42 = vpop.permute.xlu1 %987 }
 0x3a9   : > { %v993_v43 = vsel %vm660_vm3, %v988_v42, 0 }
 0x3aa   : > { %1702 = vmatpush3.bf16.msra.mxu1 %v993_v43  ;;  %v1584_v43 = vld [vmem:[%s2162_s6] ss:$0 sm:$0xff] }
 0x3ab   : > { %1230 = vmatprep.subr.bf16.mxu1 %v1755_v9 }
 0x3af   : > { %v1796_v44 = vpop.eup %1795 }
 0x3b0   : > { %v985_v45 = vmul.f32 %v1796_v44, %v1788_v23 }
 0x3b2   : > { %v986_v46 = vpack.c.bf16 %v985_v45, %v985_v45  ;;  %v1585_v45 = vld [vmem:[%s2163_s7] ss:$0 sm:$0xff] }
 0x3b4   : > { %1704 = vmatmul.mubr.msk.bf16.vlgmr.msra.gmra.mrb[20].mxu1 %vm644_vm4, %v986_v46 }
 0x3b5   : > { %1262 = vmatprep.mubr.bf16.mxu1 %v1813_v2  ;;  %1231 = vmatpush1.bf16.msra.mxu1 %v1753_v28 }
 0x3b6   : > { %1232 = vmatprep.subr.bf16.mxu1 %v1758_v30 }
 0x3b9   : > { %1233 = vmatpush1.bf16.msra.mxu1 %v1756_v31 }
 0x3ba   : > { %1234 = vmatprep.subr.bf16.mxu1 %v1761_v32 }
 0x3bd   : > { %1235 = vmatpush1.bf16.msra.mxu1 %v1759_v33 }
 0x3be   : > { %1236 = vmatprep.subr.bf16.mxu1 %v1764_v35 }
 0x3c1   : > { %1237 = vmatpush1.bf16.msra.mxu1 %v1762_v34 }
 0x44e   : > { %v698_v47 = vpop.f32.mrb[8].mxu1 }
 0x44f   : > { %v1669_v48 = vpop.f32.mrb[9].mxu1 }
 0x450   : > { %v701_v49 = vpop.f32.mrb[10].mxu1 }
 0x451   : > { %v1670_v50 = vpop.f32.mrb[11].mxu1  ;;  %v1769_v49 = vld [vmem:[%s2166_s10 + $0x50] sm:$0xff]  }
 0x452   : > { %v1770_v50 = vld [vmem:[%s2166_s10 + $0x10] sm:$0xff]  }
 0x456   : > { %v809_v53 = vpop.f32.mrb[12].mxu1 }
 0x457   : > { %1036 = vrot.lane.b32.xlu0 %v809_v53, %s1820_s27  ;;  %v1681_v54 = vpop.f32.mrb[13].mxu1  ;;  %v1773_v53 = vld [vmem:[%s2166_s10 + $0x60] sm:$0xff]  }
 0x458   : > { %v812_v2 = vpop.f32.mrb[14].mxu1  ;;  %v1774_v54 = vld [vmem:[%s2166_s10 + $0x20] sm:$0xff]  }
 0x459   : > { %v1682_v56 = vpop.f32.mrb[15].mxu1  ;;  %v1775_v2 = vld [vmem:[%s2166_s10 + $0x68] sm:$0xff]  }
 0x45a   : > { %v1777_v56 = vld [vmem:[%s2166_s10 + $0x70] sm:$0xff]  }
 0x45e   : > { %v919_v57 = vpop.f32.mrb[16].mxu1 }
 0x45f   : > { %1040 = vrot.lane.b32.xlu1 %v919_v57, %s1818_s25  ;;  %v1693_v58 = vpop.f32.mrb[17].mxu1  ;;  %v1778_v57 = vld [vmem:[%s2166_s10 + $0x30] sm:$0xff]  }
 0x460   : > { %v922_v59 = vpop.f32.mrb[18].mxu1  ;;  %v1779_v58 = vld [vmem:[%s2166_s10 + $0x78] sm:$0xff]  }
 0x461   : > { %v1694_v60 = vpop.f32.mrb[19].mxu1  ;;  %v1780_v59 = vld [vmem:[%s2166_s10 + $0x38] sm:$0xff]  }
 0x462   : > { %v1175_v60 = vld [vmem:[%s2165_s9] sm:$0x3] }
 0x463   : > { %v1180_v61 = vrot.slane %v1175_v60, %v493_v13 }
 0x487   : > { %v1029_v62 = vpop.f32.mrb[20].mxu1 }
 0x488   : > { %1044 = vrot.lane.b32.xlu0 %v1029_v62, %s1819_s26  ;;  %v1705_v63 = vpop.f32.mrb[21].mxu1  ;;  %v1184_v62 = vrot.slane %v1175_v60, %v497_v22 }
 0x489   : > { %v1032_v0 = vpop.f32.mrb[22].mxu1 }
 0x48a   : > { %v1706_v1 = vpop.f32.mrb[23].mxu1 }
 0x4c9   : > { %v1037_v3 = vpop.permute.xlu0 %1036 }
 0x4ca   : > { %v1047_v4 = vsel %vm597_vm2, %v698_v47, %v1037_v3 }
 0x4d1   : > { %v1041_v12 = vpop.permute.xlu1 %1040 }
 0x4d2   : > { %v1049_v5 = vsel %vm1048_vm5, %v1047_v4, %v1041_v12 }
 0x4fa   : > { %v1045_v6 = vpop.permute.xlu0 %1044 }
 0x4fb   : > { %v1051_v7 = vsel %vm1050_vm6, %v1049_v5, %v1045_v6 }
 0x4fc   : > { %v1052_v8 = vpack.c.bf16 %v1051_v7, %v1051_v7 }
 0x4fe   : > { %1716 = vmatmul.mubr.msk.bf16.vlgmr.msra.gmra.mrb[12].mxu0 %vm541_vm0, %v1052_v8 }
 0x4ff   : > { %1638 = vmatpush3.bf16.msra.mxu0 %v1766_v36  ;;  %v1612_v36 = vld [vmem:[%s2168_s12] ss:$0 sm:$0xff] }
 0x500   : > { %1639 = vmatprep.subr.bf16.mxu0 %v1767_v37 }
 0x503   : > { %1640 = vmatpush3.bf16.msra.mxu0 %v1768_v38  ;;  %v1613_v38 = vld [vmem:[%s2169_s13] ss:$0 sm:$0xff] }
 0x504   : > { %1641 = vmatprep.subr.bf16.mxu0 %v1769_v49 }
 0x507   : > { %1642 = vmatpush3.bf16.msra.mxu0 %v1770_v50 }
 0x508   : > { %1643 = vmatprep.subr.bf16.mxu0 %v1771_v51 }
 0x50b   : > { %1644 = vmatpush3.bf16.msra.mxu0 %v1772_v52 }
 0x50c   : > { %1645 = vmatprep.subr.bf16.mxu0 %v1773_v53 }
 0x50f   : > { %1646 = vmatpush3.bf16.msra.mxu0 %v1774_v54 }
 0x510   : > { %1647 = vmatprep.subr.bf16.mxu0 %v1775_v2 }
 0x513   : > { %1648 = vmatpush3.bf16.msra.mxu0 %v1776_v55 }
 0x514   : > { %1649 = vmatprep.subr.bf16.mxu0 %v1777_v56 }
 0x517   : > { %1650 = vmatpush3.bf16.msra.mxu0 %v1778_v57 }
 0x518   : > { %1651 = vmatprep.subr.bf16.mxu0 %v1779_v58 }
 0x51b   : > { %1652 = vmatpush3.bf16.msra.mxu0 %v1780_v59 }
 0x5d1   : > { %v1129_v15 = vpop.f32.mrb[12].mxu0 }
 0x5d2   : > { %v1130_v16 = vadd.f32 %v1578_v10, %v1129_v15  ;;  %v1717_v17 = vpop.f32.mrb[13].mxu0 }
 0x5d3   : > { %v1132_v18 = vpop.f32.mrb[14].mxu0 }
 0x5d4   : > { %v1718_v19 = vpop.f32.mrb[15].mxu0  ;;  %v1135_v20 = vadd.f32 %v1130_v16, %v479_v14 }
 0x5d5   : > { %v1595_v19 = vld [vmem:[%s2167_s11] ss:$0 sm:$0xff] }
 0x5d6   : > { %v1136_v21 = vsel %vm541_vm0, %v1135_v20, 0.0 }
 0x5d7   : > { %1137 = vadd.xlane.f32.xlu1 %v1136_v21 }
 0x664   : > { %v1138_v23 = vpop.xlane.xlu1 %1137 }
 0x665   : > { %v1140_v24 = vmul.f32 0.015625, %v1138_v23 }
 0x667   : > { %v1141_v25 = vsub.f32 %v1135_v20, %v1140_v24 }
 0x669   : > { %v1142_v26 = vmul.f32 %v1141_v25, %v1141_v25 }
 0x66b   : > { %v1143_v27 = vsel %vm541_vm0, %v1142_v26, 0.0 }
 0x66c   : > { %1144 = vadd.xlane.f32.xlu0 %v1143_v27 }
 0x6f9   : > { %v1145_v39 = vpop.xlane.xlu0 %1144 }
 0x6fa   : > { %v1146_v40 = vmul.f32 0.015625, %v1145_v39 }
 0x6fc   : > { %v1147_v41 = vadd.f32 1e-12, %v1146_v40 }
 0x6fe   : > { %1797 = vrsqrt.f32 %v1147_v41 }
 0x708   : > { %v1798_v42 = vpop.eup %1797 }
 0x709   : > { %v1149_v44 = vmul.f32 %v1798_v42, %v1141_v25 }
 0x70b   : > { %v1157_v46 = vmul.f32 %v1584_v43, %v1149_v44 }
 0x70d   : > { %v1165_v47 = vadd.f32 %v1585_v45, %v1157_v46 }
 0x70f   : > { %v1166_v48 = vpack.c.bf16 %v1165_v47, %v1165_v47 }
 0x711   : > { %1594 = vmatmul.mubr.msk.bf16.vlgmr.msra.gmra.mrb[24].mxu1 %vm541_vm0, %v1166_v48 }
 0x7e4   : > { %v1264_v63 = vpop.f32.mrb[24].mxu1 }
 0x7e5   : > { %v1265_v0 = vadd.f32 %v1264_v63, %v1180_v61  ;;  %v1266_v1 = vpop.f32.mrb[25].mxu1 }
 0x7e6   : > { %v1267_v3 = vadd.f32 %v1266_v1, %v1184_v62  ;;  %v1268_v12 = vpop.f32.mrb[26].mxu1 }
 0x7e7   : > { %v1273_v4 = vmul.f32 0.70710677, %v1265_v0  ;;  %v1269_v5 = vpop.f32.mrb[27].mxu1  ;;  %v1271_v10 = vmul.f32 0.5, %v1265_v0 }
 0x7e8   : > { %v1274_v6 = vmul.f32 0.70710677, %v1267_v3  ;;  %v1272_v15 = vmul.f32 0.5, %v1267_v3 }
 0x7e9   : > { %1799 = verf.f32 %v1273_v4 }
 0x7ea   : > { %1801 = verf.f32 %v1274_v6 }
 0x7f3   : > { %v1800_v7 = vpop.eup %1799 }
 0x7f4   : > { %v1802_v8 = vpop.eup %1801  ;;  %v1277_v14 = vadd.f32 1.0, %v1800_v7 }
 0x7f5   : > { %v1278_v16 = vadd.f32 1.0, %v1802_v8 }
 0x7f6   : > { %v1279_v13 = vmul.f32 %v1277_v14, %v1271_v10 }
 0x7f7   : > { %v1280_v17 = vmul.f32 %v1278_v16, %v1272_v15 }
 0x7f8   : > { %v1281_v22 = vpack.c.bf16 %v1279_v13, %v1279_v13 }
 0x7f9   : > { %v1282_v11 = vpack.c.bf16 %v1280_v17, %v1280_v17 }
 0x7fb   : > { %1450 = vmatprep.mubr.bf16.mxu0 %v1282_v11 }
 0x7fc   : > { %1451 = vmatmul.mubr.bf16.vlgmr.msra.gmra.mrb[16].mxu0 %v1281_v22 }
 0x8cf   : > { %v1653_v18 = vpop.f32.mrb[16].mxu0 }
 0x8d0   : > { %v1654_v20 = vpop.f32.mrb[17].mxu0 }
 0x8d1   : > { %v1655_v21 = vadd.f32 %v1654_v20, %v1653_v18  ;;  %v1656_v23 = vpop.f32.mrb[18].mxu0 }
 0x8d2   : > { %v1657_v24 = vpop.f32.mrb[19].mxu0 }
 0x8d3   : > { %v1453_v25 = vadd.f32 %v1655_v21, %v1595_v19 }
 0x8d5   : > { %v1458_v26 = vadd.f32 %v1453_v25, %v1165_v47 }
 0x8d7   : > { %v1459_v27 = vsel %vm541_vm0, %v1458_v26, 0.0 }
 0x8d8   : > { %1460 = vadd.xlane.f32.xlu0 %v1459_v27 }
 0x965   : > { %v1461_v9 = vpop.xlane.xlu0 %1460 }
 0x966   : > { %v1462_v28 = vmul.f32 0.015625, %v1461_v9 }
 0x968   : > { %v1463_v30 = vsub.f32 %v1458_v26, %v1462_v28 }
 0x96a   : > { %v1464_v31 = vmul.f32 %v1463_v30, %v1463_v30 }
 0x96c   : > { %v1465_v32 = vsel %vm541_vm0, %v1464_v31, 0.0 }
 0x96d   : > { %1466 = vadd.xlane.f32.xlu1 %v1465_v32 }
 0x9fa   : > { %v1467_v33 = vpop.xlane.xlu1 %1466 }
 0x9fb   : > { %v1468_v34 = vmul.f32 0.015625, %v1467_v33 }
 0x9fd   : > { %v1469_v35 = vadd.f32 1e-12, %v1468_v34 }
 0x9ff   : > { %1803 = vrsqrt.f32 %v1469_v35 }
 0xa09   : > { %v1804_v29 = vpop.eup %1803 }
 0xa0a   : > { %v1471_v37 = vmul.f32 %v1804_v29, %v1463_v30 }
 0xa0c   : > { %v1479_v39 = vmul.f32 %v1612_v36, %v1471_v37 }
 0xa0e   : > { %v1487_v40 = vadd.f32 %v1613_v38, %v1479_v39 }
 0xa10   : > { %v1488_v41 = vpack.c.bf16 %v1487_v40, %v1487_v40 }
 0xa12   : > { %1490 = vst.msk [vmem:[%s476_s16] sm:$0xf] %vm1489_vm7, %v1488_v41 }
 0xa13 PF: > { %s24_s29 = sadd.s32 1, %s1811_s29  }
 0xa14   : > { %p21_p4 = scmp.ge.s32.totalorder %s24_s29, 4  }
 0xa16   :  { %23 = sbr.rel (!%p21_p4) target bundleno = 1 (0x1), region = 109 }

</bundles_post_ra>
